<compile_context>
chip_gen: v5e
topology: v5e:2x2
jax: 0.10.0
libtpu: 0.0.40
codegen_flags: <defaults>
</compile_context>

<pallas_src>
import jax
import jax.numpy as jnp
import numpy as np
from jax.experimental import pallas as pl
from jax.experimental.pallas import tpu as pltpu


def _silu(x):
    return x * jax.nn.sigmoid(x)


def _round_up(v, m):
    return (v + m - 1) // m * m


# ----------------------------------------------------------------------------
# Fused Pallas kernel:  out = conv2(silu(conv1(x) + temb)) + conv1(x)
# Layout: channels on sublanes, flattened batch*spatial (multiple of 128) on
# lanes; one grid step processes the whole batch.
# ----------------------------------------------------------------------------
def _make_layer_kernel(W, L, Cin, Cout, CG, KC):
    # Static lane shifts for the 9 taps of a 3x3 window on the flattened,
    # image-major lane axis (shift direction matches jnp.roll semantics).
    shifts = []
    for kh in range(3):
        for kw in range(3):
            dh, dw = kh - 1, kw - 1
            shifts.append((-(dh * W + dw)) % L)
    CENTER = 4            # tap (1,1): always valid -> no roll, no mask multiply
    ONES_ROW = 9 * CG     # constant-1 row used by the folded-bias trick

    def kernel(x_ref, t_ref, mask_ref, sel_ref, w1_ref, w2_ref, wt_ref, bt_ref,
               out_ref, tap_ref):
        # One-time scratch init (scratch persists across grid steps): zero the
        # K-padding rows (never 0*NaN from uninitialised VMEM) and plant the
        # constant-1 row for the folded conv biases.
        @pl.when(pl.program_id(0) == 0)
        def _init():
            tap_ref[...] = jnp.zeros_like(tap_ref)
            bias_rows = jnp.concatenate(
                [jnp.ones((1, L), jnp.float32), jnp.zeros((7, L), jnp.float32)],
                axis=0)
            tap_ref[ONES_ROW:, :] = bias_rows.astype(tap_ref.dtype)

        def im2col(src, c):
            """Pack 9 shifted+masked copies of src (c, L) f32 into the bf16 tap buffer."""
            for k, shift in enumerate(shifts):
                if k == CENTER:
                    val = src
                else:
                    rolled = pltpu.roll(src, shift=shift, axis=1)
                    val = rolled * mask_ref[k:k + 1, :]     # mask replaces select
                tap_ref[k * CG:k * CG + c, :] = val.astype(tap_ref.dtype)

        # conv_block: h = W1p @ im2col(x)        (bias folded into the matmul)
        x = x_ref[...].astype(jnp.float32)                       # (Cin, L)
        im2col(x, Cin)
        h = jnp.dot(w1_ref[...], tap_ref[...],
                    preferred_element_type=jnp.float32)          # (Cout, L) f32

        # time embedding (f32): temb per image, then broadcast to that image's
        # lanes via a 0/1 selector matmul (stays lane dense, MXU is idle anyway).
        st = _silu(t_ref[...].astype(jnp.float32))               # (Tdim, Npad)
        temb = jnp.dot(wt_ref[...], st,
                       preferred_element_type=jnp.float32) + bt_ref[...]
        temb_lanes = jnp.dot(temb, sel_ref[...],
                             preferred_element_type=jnp.float32)  # (Cout, L)

        # second conv on silu(h + temb) + residual, all without leaving VMEM.
        y = _silu(h + temb_lanes)
        im2col(y, Cout)
        out = jnp.dot(w2_ref[...], tap_ref[...],
                      preferred_element_type=jnp.float32) + h
        out_ref[...] = out.astype(out_ref.dtype)

    return kernel


def _pack_conv_weight(w_hwio, bias, cg, kc):
    """(3,3,Ci,Co) HWIO + bias -> (Co, kc) bf16: columns (tap, in-ch) with group
    stride cg, then a bias column and zero alignment-pad columns."""
    kh, kw, ci, co = w_hwio.shape
    w = jnp.transpose(w_hwio, (3, 0, 1, 2)).reshape(co, kh * kw, ci)
    w = jnp.pad(w, ((0, 0), (0, 0), (0, cg - ci))).reshape(co, kh * kw * cg)
    pad = jnp.zeros((co, kc - kh * kw * cg - 1), w.dtype)
    return jnp.concatenate([w, bias.reshape(co, 1), pad], axis=1).astype(jnp.bfloat16)


@jax.jit
def layer_forward(params, x_nchw, t):
    """Pallas implementation of Layer.forward(x, t) = block(conv(x), t)."""
    N, Cin, H, W = x_nchw.shape
    HW = H * W
    L = N * HW                                 # lanes: whole batch folded
    Cout = params["w_conv"].shape[-1]
    Tdim = t.shape[-1]
    CG = _round_up(max(Cin, Cout), 8)          # shared K-group stride (one scratch)
    KC = 9 * CG + 8                            # + bias row (+7 alignment rows)
    NP = _round_up(N, 8)

    # Lane-dense layout plumbing (wrapper-side, cheap): channels -> sublanes,
    # image-major batch*spatial -> lanes.
    x_lanes = x_nchw.reshape(N, Cin, HW).transpose(1, 0, 2).reshape(Cin, L)
    t_pad = jnp.zeros((Tdim, NP), jnp.float32).at[:, :N].set(t.T)

    # Hoisted constants (perf review): 3x3 tap validity masks (periodic per
    # image) and the image-id one-hot selector for the temb broadcast.
    pos = jnp.arange(HW, dtype=jnp.int32)
    row, col = pos // W, pos % W
    masks = []
    for kh in range(3):
        for kw in range(3):
            dh, dw = kh - 1, kw - 1
            masks.append(((row + dh >= 0) & (row + dh < H) &
                          (col + dw >= 0) & (col + dw < W)).astype(jnp.float32))
    mask = jnp.tile(jnp.stack(masks), (1, N))                        # (9, L)
    sel = (jnp.arange(NP)[:, None] ==
           (jnp.arange(L) // HW)[None, :]).astype(jnp.float32)       # (NP, L)

    w1 = _pack_conv_weight(params["w_conv"], params["b_conv"], CG, KC)
    w2 = _pack_conv_weight(params["w_conv2"], params["b_conv2"], CG, KC)
    wt = params["w_t"].T.astype(jnp.float32)                         # (Cout, Tdim)
    bt = params["b_t"].reshape(Cout, 1)

    kernel = _make_layer_kernel(W, L, Cin, Cout, CG, KC)

    cost = pl.CostEstimate(
        flops=int(2 * L * Cout * (2 * KC + NP) + 2 * Cout * Tdim * NP),
        transcendentals=int(L * Cout + Tdim * NP),
        bytes_accessed=int(4 * (x_lanes.size + Cout * L + t_pad.size + mask.size
                                + sel.size + wt.size + Cout)
                           + 2 * (w1.size + w2.size)),
    )

    out_lanes = pl.pallas_call(
        kernel,
        out_shape=jax.ShapeDtypeStruct((Cout, L), jnp.float32),
        grid=(1,),
        in_specs=[
            pl.BlockSpec((Cin, L), lambda i: (0, 0)),       # x, lane dense
            pl.BlockSpec((Tdim, NP), lambda i: (0, 0)),     # silu input t (padded)
            pl.BlockSpec((9, L), lambda i: (0, 0)),         # tap validity masks
            pl.BlockSpec((NP, L), lambda i: (0, 0)),        # image one-hot selector
            pl.BlockSpec((Cout, KC), lambda i: (0, 0)),     # packed conv1 w+b (bf16)
            pl.BlockSpec((Cout, KC), lambda i: (0, 0)),     # packed conv2 w+b (bf16)
            pl.BlockSpec((Cout, Tdim), lambda i: (0, 0)),   # time-linear weight
            pl.BlockSpec((Cout, 1), lambda i: (0, 0)),      # time-linear bias
        ],
        out_specs=pl.BlockSpec((Cout, L), lambda i: (0, 0)),
        scratch_shapes=[pltpu.VMEM((KC, L), jnp.bfloat16)],  # shared im2col buffer
        compiler_params=pltpu.CompilerParams(dimension_semantics=("arbitrary",)),
        cost_estimate=cost,
    )(x_lanes, t_pad, mask, sel, w1, w2, wt, bt)

    return out_lanes.reshape(Cout, N, HW).transpose(1, 0, 2).reshape(N, Cout, H, W)


# ----------------------------------------------------------------------------
# Pure-JAX reference (mirrors the PyTorch f32 semantics)
# ----------------------------------------------------------------------------
def layer_reference(params, x_nchw, t):
    x = jnp.transpose(x_nchw, (0, 2, 3, 1))

    def conv(z, w, b):
        y = jax.lax.conv_general_dilated(
            z, w, (1, 1), ((1, 1), (1, 1)),
            dimension_numbers=("NHWC", "HWIO", "NHWC"),
            precision=jax.lax.Precision.HIGHEST)
        return y + b.reshape(1, 1, 1, -1)

    h = conv(x, params["w_conv"], params["b_conv"])
    temb = jnp.dot(_silu(t), params["w_t"],
                   precision=jax.lax.Precision.HIGHEST) + params["b_t"]
    y = _silu(h + temb[:, None, None, :])
    y = conv(y, params["w_conv2"], params["b_conv2"])
    out = h + y
    return jnp.transpose(out, (0, 3, 1, 2))


# ----------------------------------------------------------------------------
if __name__ == "__main__":
    N, Cin, Cout, H, W, Tdim = 2, 4, 8, 16, 16, 32

    key = jax.random.PRNGKey(0)
    k = jax.random.split(key, 8)
    params = {
        "w_conv":  0.2 * jax.random.normal(k[0], (3, 3, Cin, Cout), jnp.float32),
        "b_conv":  0.1 * jax.random.normal(k[1], (1, Cout), jnp.float32),
        "w_t":     0.2 * jax.random.normal(k[2], (Tdim, Cout), jnp.float32),
        "b_t":     0.1 * jax.random.normal(k[3], (1, Cout), jnp.float32),
        "w_conv2": 0.2 * jax.random.normal(k[4], (3, 3, Cout, Cout), jnp.float32),
        "b_conv2": 0.1 * jax.random.normal(k[5], (1, Cout), jnp.float32),
    }
    x = jax.random.normal(k[6], (N, Cin, H, W), jnp.float32)   # NCHW like PyTorch
    t = jax.random.normal(k[7], (N, Tdim), jnp.float32)        # time embedding

    out = jax.block_until_ready(layer_forward(params, x, t))
    ref = jax.block_until_ready(layer_reference(params, x, t))

    assert out.shape == (N, Cout, H, W), out.shape
    # bf16 MXU operands (per perf review) vs. the f32 reference: tolerance is
    # widened from 2e-3 to the expected max quantisation error of a K~72 dot
    # (two stacked 3x3 convs) accumulated in f32.
    np.testing.assert_allclose(np.asarray(out), np.asarray(ref),
                               rtol=2e-2, atol=3e-2)
    print("KERNEL_OK")
</pallas_src>

<mosaic_0001>
module attributes {stable_mosaic.version = 11 : i64} {
  func.func @kernel(%arg0: i32, %arg1: memref<4x512xf32, #tpu.memory_space<vmem>>, %arg2: memref<32x8xf32, #tpu.memory_space<vmem>>, %arg3: memref<9x512xf32, #tpu.memory_space<vmem>>, %arg4: memref<8x512xf32, #tpu.memory_space<vmem>>, %arg5: memref<8x80xbf16, #tpu.memory_space<vmem>>, %arg6: memref<8x80xbf16, #tpu.memory_space<vmem>>, %arg7: memref<8x32xf32, #tpu.memory_space<vmem>>, %arg8: memref<8x1xf32, #tpu.memory_space<vmem>>, %arg9: memref<8x512xf32, #tpu.memory_space<vmem>>, %arg10: memref<80x512xbf16, #tpu.memory_space<vmem>>) attributes {dimension_semantics = [#tpu.dimension_semantics<arbitrary>], iteration_bounds = array<i64: 1>, scalar_prefetch = 0 : i64, scratch_operands = 1 : i64, tpu.core_type = #tpu.core_type<tc>, window_params = [{pipeline_mode = #tpu.pipeline_mode<synchronous>, transform_indices = @transform_0, window_bounds = array<i64: 4, 512>}, {pipeline_mode = #tpu.pipeline_mode<synchronous>, transform_indices = @transform_1, window_bounds = array<i64: 32, 8>}, {pipeline_mode = #tpu.pipeline_mode<synchronous>, transform_indices = @transform_2, window_bounds = array<i64: 9, 512>}, {pipeline_mode = #tpu.pipeline_mode<synchronous>, transform_indices = @transform_3, window_bounds = array<i64: 8, 512>}, {pipeline_mode = #tpu.pipeline_mode<synchronous>, transform_indices = @transform_4, window_bounds = array<i64: 8, 80>}, {pipeline_mode = #tpu.pipeline_mode<synchronous>, transform_indices = @transform_5, window_bounds = array<i64: 8, 80>}, {pipeline_mode = #tpu.pipeline_mode<synchronous>, transform_indices = @transform_6, window_bounds = array<i64: 8, 32>}, {pipeline_mode = #tpu.pipeline_mode<synchronous>, transform_indices = @transform_7, window_bounds = array<i64: 8, 1>}, {pipeline_mode = #tpu.pipeline_mode<synchronous>, transform_indices = @transform_8, window_bounds = array<i64: 8, 512>}]} {
    %c0_i32 = arith.constant 0 : i32
    %0 = arith.cmpi eq, %arg0, %c0_i32 : i32
    %1 = arith.extui %0 : i1 to i32
    %c0_i32_0 = arith.constant 0 : i32
    %2 = arith.cmpi ne, %1, %c0_i32_0 : i32
    scf.if %2 {
      %cst_87 = arith.constant 0.000000e+00 : bf16
      %133 = vector.broadcast %cst_87 : bf16 to vector<80x512xbf16>
      %c0_88 = arith.constant 0 : index
      %c0_89 = arith.constant 0 : index
      %134 = vector.load %arg10[%c0_88, %c0_89] : memref<80x512xbf16, #tpu.memory_space<vmem>>, vector<80x512xbf16>
      tpu.vector_store %arg10[%c0_88, %c0_89], %133 {strides = array<i32>} : memref<80x512xbf16, #tpu.memory_space<vmem>>, vector<80x512xbf16>,
      %cst_90 = arith.constant 1.000000e+00 : f32
      %135 = vector.broadcast %cst_90 : f32 to vector<1x512xf32>
      %cst_91 = arith.constant 0.000000e+00 : f32
      %136 = vector.broadcast %cst_91 : f32 to vector<7x512xf32>
      %137 = tpu.concatenate %135, %136 in 0 : vector<1x512xf32>, vector<7x512xf32> -> vector<8x512xf32>
      %138 = arith.truncf %137 : vector<8x512xf32> to vector<8x512xbf16>
      %c72 = arith.constant 72 : index
      %c0_92 = arith.constant 0 : index
      %139 = vector.load %arg10[%c72, %c0_92] : memref<80x512xbf16, #tpu.memory_space<vmem>>, vector<8x512xbf16>
      tpu.vector_store %arg10[%c72, %c0_92], %138 {strides = array<i32>} : memref<80x512xbf16, #tpu.memory_space<vmem>>, vector<8x512xbf16>,
    } else {
    }
    %c0 = arith.constant 0 : index
    %c0_1 = arith.constant 0 : index
    %3 = vector.load %arg1[%c0, %c0_1] : memref<4x512xf32, #tpu.memory_space<vmem>>, vector<4x512xf32>
    %c17_i32 = arith.constant 17 : i32
    %4 = tpu.dynamic_rotate %3 by %c17_i32 dim 1 : vector<4x512xf32>, i32 -> vector<4x512xf32>
    %c0_2 = arith.constant 0 : index
    %c0_3 = arith.constant 0 : index
    %5 = vector.load %arg3[%c0_2, %c0_3] : memref<9x512xf32, #tpu.memory_space<vmem>>, vector<1x512xf32>
    %6 = vector.broadcast %5 : vector<1x512xf32> to vector<4x512xf32>
    %7 = arith.mulf %4, %6 : vector<4x512xf32>
    %8 = arith.truncf %7 : vector<4x512xf32> to vector<4x512xbf16>
    %c0_4 = arith.constant 0 : index
    %c0_5 = arith.constant 0 : index
    %9 = vector.load %arg10[%c0_4, %c0_5] : memref<80x512xbf16, #tpu.memory_space<vmem>>, vector<4x512xbf16>
    tpu.vector_store %arg10[%c0_4, %c0_5], %8 {strides = array<i32>} : memref<80x512xbf16, #tpu.memory_space<vmem>>, vector<4x512xbf16>,
    %c16_i32 = arith.constant 16 : i32
    %10 = tpu.dynamic_rotate %3 by %c16_i32 dim 1 : vector<4x512xf32>, i32 -> vector<4x512xf32>
    %c1 = arith.constant 1 : index
    %c0_6 = arith.constant 0 : index
    %11 = vector.load %arg3[%c1, %c0_6] : memref<9x512xf32, #tpu.memory_space<vmem>>, vector<1x512xf32>
    %12 = vector.broadcast %11 : vector<1x512xf32> to vector<4x512xf32>
    %13 = arith.mulf %10, %12 : vector<4x512xf32>
    %14 = arith.truncf %13 : vector<4x512xf32> to vector<4x512xbf16>
    %c8 = arith.constant 8 : index
    %c0_7 = arith.constant 0 : index
    %15 = vector.load %arg10[%c8, %c0_7] : memref<80x512xbf16, #tpu.memory_space<vmem>>, vector<4x512xbf16>
    tpu.vector_store %arg10[%c8, %c0_7], %14 {strides = array<i32>} : memref<80x512xbf16, #tpu.memory_space<vmem>>, vector<4x512xbf16>,
    %c15_i32 = arith.constant 15 : i32
    %16 = tpu.dynamic_rotate %3 by %c15_i32 dim 1 : vector<4x512xf32>, i32 -> vector<4x512xf32>
    %c2 = arith.constant 2 : index
    %c0_8 = arith.constant 0 : index
    %17 = vector.load %arg3[%c2, %c0_8] : memref<9x512xf32, #tpu.memory_space<vmem>>, vector<1x512xf32>
    %18 = vector.broadcast %17 : vector<1x512xf32> to vector<4x512xf32>
    %19 = arith.mulf %16, %18 : vector<4x512xf32>
    %20 = arith.truncf %19 : vector<4x512xf32> to vector<4x512xbf16>
    %c16 = arith.constant 16 : index
    %c0_9 = arith.constant 0 : index
    %21 = vector.load %arg10[%c16, %c0_9] : memref<80x512xbf16, #tpu.memory_space<vmem>>, vector<4x512xbf16>
    tpu.vector_store %arg10[%c16, %c0_9], %20 {strides = array<i32>} : memref<80x512xbf16, #tpu.memory_space<vmem>>, vector<4x512xbf16>,
    %c1_i32 = arith.constant 1 : i32
    %22 = tpu.dynamic_rotate %3 by %c1_i32 dim 1 : vector<4x512xf32>, i32 -> vector<4x512xf32>
    %c3 = arith.constant 3 : index
    %c0_10 = arith.constant 0 : index
    %23 = vector.load %arg3[%c3, %c0_10] : memref<9x512xf32, #tpu.memory_space<vmem>>, vector<1x512xf32>
    %24 = vector.broadcast %23 : vector<1x512xf32> to vector<4x512xf32>
    %25 = arith.mulf %22, %24 : vector<4x512xf32>
    %26 = arith.truncf %25 : vector<4x512xf32> to vector<4x512xbf16>
    %c24 = arith.constant 24 : index
    %c0_11 = arith.constant 0 : index
    %27 = vector.load %arg10[%c24, %c0_11] : memref<80x512xbf16, #tpu.memory_space<vmem>>, vector<4x512xbf16>
    tpu.vector_store %arg10[%c24, %c0_11], %26 {strides = array<i32>} : memref<80x512xbf16, #tpu.memory_space<vmem>>, vector<4x512xbf16>,
    %28 = arith.truncf %3 : vector<4x512xf32> to vector<4x512xbf16>
    %c32 = arith.constant 32 : index
    %c0_12 = arith.constant 0 : index
    %29 = vector.load %arg10[%c32, %c0_12] : memref<80x512xbf16, #tpu.memory_space<vmem>>, vector<4x512xbf16>
    tpu.vector_store %arg10[%c32, %c0_12], %28 {strides = array<i32>} : memref<80x512xbf16, #tpu.memory_space<vmem>>, vector<4x512xbf16>,
    %c511_i32 = arith.constant 511 : i32
    %30 = tpu.dynamic_rotate %3 by %c511_i32 dim 1 : vector<4x512xf32>, i32 -> vector<4x512xf32>
    %c5 = arith.constant 5 : index
    %c0_13 = arith.constant 0 : index
    %31 = vector.load %arg3[%c5, %c0_13] : memref<9x512xf32, #tpu.memory_space<vmem>>, vector<1x512xf32>
    %32 = vector.broadcast %31 : vector<1x512xf32> to vector<4x512xf32>
    %33 = arith.mulf %30, %32 : vector<4x512xf32>
    %34 = arith.truncf %33 : vector<4x512xf32> to vector<4x512xbf16>
    %c40 = arith.constant 40 : index
    %c0_14 = arith.constant 0 : index
    %35 = vector.load %arg10[%c40, %c0_14] : memref<80x512xbf16, #tpu.memory_space<vmem>>, vector<4x512xbf16>
    tpu.vector_store %arg10[%c40, %c0_14], %34 {strides = array<i32>} : memref<80x512xbf16, #tpu.memory_space<vmem>>, vector<4x512xbf16>,
    %c497_i32 = arith.constant 497 : i32
    %36 = tpu.dynamic_rotate %3 by %c497_i32 dim 1 : vector<4x512xf32>, i32 -> vector<4x512xf32>
    %c6 = arith.constant 6 : index
    %c0_15 = arith.constant 0 : index
    %37 = vector.load %arg3[%c6, %c0_15] : memref<9x512xf32, #tpu.memory_space<vmem>>, vector<1x512xf32>
    %38 = vector.broadcast %37 : vector<1x512xf32> to vector<4x512xf32>
    %39 = arith.mulf %36, %38 : vector<4x512xf32>
    %40 = arith.truncf %39 : vector<4x512xf32> to vector<4x512xbf16>
    %c48 = arith.constant 48 : index
    %c0_16 = arith.constant 0 : index
    %41 = vector.load %arg10[%c48, %c0_16] : memref<80x512xbf16, #tpu.memory_space<vmem>>, vector<4x512xbf16>
    tpu.vector_store %arg10[%c48, %c0_16], %40 {strides = array<i32>} : memref<80x512xbf16, #tpu.memory_space<vmem>>, vector<4x512xbf16>,
    %c496_i32 = arith.constant 496 : i32
    %42 = tpu.dynamic_rotate %3 by %c496_i32 dim 1 : vector<4x512xf32>, i32 -> vector<4x512xf32>
    %c7 = arith.constant 7 : index
    %c0_17 = arith.constant 0 : index
    %43 = vector.load %arg3[%c7, %c0_17] : memref<9x512xf32, #tpu.memory_space<vmem>>, vector<1x512xf32>
    %44 = vector.broadcast %43 : vector<1x512xf32> to vector<4x512xf32>
    %45 = arith.mulf %42, %44 : vector<4x512xf32>
    %46 = arith.truncf %45 : vector<4x512xf32> to vector<4x512xbf16>
    %c56 = arith.constant 56 : index
    %c0_18 = arith.constant 0 : index
    %47 = vector.load %arg10[%c56, %c0_18] : memref<80x512xbf16, #tpu.memory_space<vmem>>, vector<4x512xbf16>
    tpu.vector_store %arg10[%c56, %c0_18], %46 {strides = array<i32>} : memref<80x512xbf16, #tpu.memory_space<vmem>>, vector<4x512xbf16>,
    %c495_i32 = arith.constant 495 : i32
    %48 = tpu.dynamic_rotate %3 by %c495_i32 dim 1 : vector<4x512xf32>, i32 -> vector<4x512xf32>
    %c8_19 = arith.constant 8 : index
    %c0_20 = arith.constant 0 : index
    %49 = vector.load %arg3[%c8_19, %c0_20] : memref<9x512xf32, #tpu.memory_space<vmem>>, vector<1x512xf32>
    %50 = vector.broadcast %49 : vector<1x512xf32> to vector<4x512xf32>
    %51 = arith.mulf %48, %50 : vector<4x512xf32>
    %52 = arith.truncf %51 : vector<4x512xf32> to vector<4x512xbf16>
    %c64 = arith.constant 64 : index
    %c0_21 = arith.constant 0 : index
    %53 = vector.load %arg10[%c64, %c0_21] : memref<80x512xbf16, #tpu.memory_space<vmem>>, vector<4x512xbf16>
    tpu.vector_store %arg10[%c64, %c0_21], %52 {strides = array<i32>} : memref<80x512xbf16, #tpu.memory_space<vmem>>, vector<4x512xbf16>,
    %c0_22 = arith.constant 0 : index
    %c0_23 = arith.constant 0 : index
    %54 = vector.load %arg5[%c0_22, %c0_23] : memref<8x80xbf16, #tpu.memory_space<vmem>>, vector<8x80xbf16>
    %c0_24 = arith.constant 0 : index
    %c0_25 = arith.constant 0 : index
    %55 = vector.load %arg10[%c0_24, %c0_25] : memref<80x512xbf16, #tpu.memory_space<vmem>>, vector<80x512xbf16>
    %cst = arith.constant dense<0.000000e+00> : vector<8x512xf32>
    %56 = tpu.matmul %54, %55, %cst {dimension_numbers = #tpu.dot_dimension_numbers<[1], [0], [0], [1], [0, 0, 1, 1], [], []>} : vector<8x80xbf16>, vector<80x512xbf16>, vector<8x512xf32> -> vector<8x512xf32>
    %c0_26 = arith.constant 0 : index
    %c0_27 = arith.constant 0 : index
    %57 = vector.load %arg2[%c0_26, %c0_27] : memref<32x8xf32, #tpu.memory_space<vmem>>, vector<32x8xf32>
    %58 = arith.negf %57 : vector<32x8xf32>
    %59 = math.exp %58 : vector<32x8xf32>
    %cst_28 = arith.constant 1.000000e+00 : f32
    %60 = vector.broadcast %cst_28 : f32 to vector<32x8xf32>
    %61 = arith.addf %60, %59 : vector<32x8xf32>
    %62 = arith.divf %60, %61 : vector<32x8xf32>
    %63 = arith.mulf %57, %62 : vector<32x8xf32>
    %c0_29 = arith.constant 0 : index
    %c0_30 = arith.constant 0 : index
    %64 = vector.load %arg7[%c0_29, %c0_30] : memref<8x32xf32, #tpu.memory_space<vmem>>, vector<8x32xf32>
    %cst_31 = arith.constant dense<0.000000e+00> : vector<8x8xf32>
    %65 = tpu.matmul %64, %63, %cst_31 {dimension_numbers = #tpu.dot_dimension_numbers<[1], [0], [0], [1], [0, 0, 1, 1], [], []>} : vector<8x32xf32>, vector<32x8xf32>, vector<8x8xf32> -> vector<8x8xf32>
    %c0_32 = arith.constant 0 : index
    %c0_33 = arith.constant 0 : index
    %66 = vector.load %arg8[%c0_32, %c0_33] : memref<8x1xf32, #tpu.memory_space<vmem>>, vector<8x1xf32>
    %67 = vector.broadcast %66 : vector<8x1xf32> to vector<8x8xf32>
    %68 = arith.addf %65, %67 : vector<8x8xf32>
    %c0_34 = arith.constant 0 : index
    %c0_35 = arith.constant 0 : index
    %69 = vector.load %arg4[%c0_34, %c0_35] : memref<8x512xf32, #tpu.memory_space<vmem>>, vector<8x512xf32>
    %cst_36 = arith.constant dense<0.000000e+00> : vector<8x512xf32>
    %70 = tpu.matmul %68, %69, %cst_36 {dimension_numbers = #tpu.dot_dimension_numbers<[1], [0], [0], [1], [0, 0, 1, 1], [], []>} : vector<8x8xf32>, vector<8x512xf32>, vector<8x512xf32> -> vector<8x512xf32>
    %71 = arith.addf %56, %70 : vector<8x512xf32>
    %72 = arith.negf %71 : vector<8x512xf32>
    %73 = math.exp %72 : vector<8x512xf32>
    %cst_37 = arith.constant 1.000000e+00 : f32
    %74 = vector.broadcast %cst_37 : f32 to vector<8x512xf32>
    %75 = arith.addf %74, %73 : vector<8x512xf32>
    %76 = arith.divf %74, %75 : vector<8x512xf32>
    %77 = arith.mulf %71, %76 : vector<8x512xf32>
    %c17_i32_38 = arith.constant 17 : i32
    %78 = tpu.dynamic_rotate %77 by %c17_i32_38 dim 1 : vector<8x512xf32>, i32 -> vector<8x512xf32>
    %c0_39 = arith.constant 0 : index
    %c0_40 = arith.constant 0 : index
    %79 = vector.load %arg3[%c0_39, %c0_40] : memref<9x512xf32, #tpu.memory_space<vmem>>, vector<1x512xf32>
    %80 = vector.broadcast %79 : vector<1x512xf32> to vector<8x512xf32>
    %81 = arith.mulf %78, %80 : vector<8x512xf32>
    %82 = arith.truncf %81 : vector<8x512xf32> to vector<8x512xbf16>
    %c0_41 = arith.constant 0 : index
    %c0_42 = arith.constant 0 : index
    %83 = vector.load %arg10[%c0_41, %c0_42] : memref<80x512xbf16, #tpu.memory_space<vmem>>, vector<8x512xbf16>
    tpu.vector_store %arg10[%c0_41, %c0_42], %82 {strides = array<i32>} : memref<80x512xbf16, #tpu.memory_space<vmem>>, vector<8x512xbf16>,
    %c16_i32_43 = arith.constant 16 : i32
    %84 = tpu.dynamic_rotate %77 by %c16_i32_43 dim 1 : vector<8x512xf32>, i32 -> vector<8x512xf32>
    %c1_44 = arith.constant 1 : index
    %c0_45 = arith.constant 0 : index
    %85 = vector.load %arg3[%c1_44, %c0_45] : memref<9x512xf32, #tpu.memory_space<vmem>>, vector<1x512xf32>
    %86 = vector.broadcast %85 : vector<1x512xf32> to vector<8x512xf32>
    %87 = arith.mulf %84, %86 : vector<8x512xf32>
    %88 = arith.truncf %87 : vector<8x512xf32> to vector<8x512xbf16>
    %c8_46 = arith.constant 8 : index
    %c0_47 = arith.constant 0 : index
    %89 = vector.load %arg10[%c8_46, %c0_47] : memref<80x512xbf16, #tpu.memory_space<vmem>>, vector<8x512xbf16>
    tpu.vector_store %arg10[%c8_46, %c0_47], %88 {strides = array<i32>} : memref<80x512xbf16, #tpu.memory_space<vmem>>, vector<8x512xbf16>,
    %c15_i32_48 = arith.constant 15 : i32
    %90 = tpu.dynamic_rotate %77 by %c15_i32_48 dim 1 : vector<8x512xf32>, i32 -> vector<8x512xf32>
    %c2_49 = arith.constant 2 : index
    %c0_50 = arith.constant 0 : index
    %91 = vector.load %arg3[%c2_49, %c0_50] : memref<9x512xf32, #tpu.memory_space<vmem>>, vector<1x512xf32>
    %92 = vector.broadcast %91 : vector<1x512xf32> to vector<8x512xf32>
    %93 = arith.mulf %90, %92 : vector<8x512xf32>
    %94 = arith.truncf %93 : vector<8x512xf32> to vector<8x512xbf16>
    %c16_51 = arith.constant 16 : index
    %c0_52 = arith.constant 0 : index
    %95 = vector.load %arg10[%c16_51, %c0_52] : memref<80x512xbf16, #tpu.memory_space<vmem>>, vector<8x512xbf16>
    tpu.vector_store %arg10[%c16_51, %c0_52], %94 {strides = array<i32>} : memref<80x512xbf16, #tpu.memory_space<vmem>>, vector<8x512xbf16>,
    %c1_i32_53 = arith.constant 1 : i32
    %96 = tpu.dynamic_rotate %77 by %c1_i32_53 dim 1 : vector<8x512xf32>, i32 -> vector<8x512xf32>
    %c3_54 = arith.constant 3 : index
    %c0_55 = arith.constant 0 : index
    %97 = vector.load %arg3[%c3_54, %c0_55] : memref<9x512xf32, #tpu.memory_space<vmem>>, vector<1x512xf32>
    %98 = vector.broadcast %97 : vector<1x512xf32> to vector<8x512xf32>
    %99 = arith.mulf %96, %98 : vector<8x512xf32>
    %100 = arith.truncf %99 : vector<8x512xf32> to vector<8x512xbf16>
    %c24_56 = arith.constant 24 : index
    %c0_57 = arith.constant 0 : index
    %101 = vector.load %arg10[%c24_56, %c0_57] : memref<80x512xbf16, #tpu.memory_space<vmem>>, vector<8x512xbf16>
    tpu.vector_store %arg10[%c24_56, %c0_57], %100 {strides = array<i32>} : memref<80x512xbf16, #tpu.memory_space<vmem>>, vector<8x512xbf16>,
    %102 = arith.truncf %77 : vector<8x512xf32> to vector<8x512xbf16>
    %c32_58 = arith.constant 32 : index
    %c0_59 = arith.constant 0 : index
    %103 = vector.load %arg10[%c32_58, %c0_59] : memref<80x512xbf16, #tpu.memory_space<vmem>>, vector<8x512xbf16>
    tpu.vector_store %arg10[%c32_58, %c0_59], %102 {strides = array<i32>} : memref<80x512xbf16, #tpu.memory_space<vmem>>, vector<8x512xbf16>,
    %c511_i32_60 = arith.constant 511 : i32
    %104 = tpu.dynamic_rotate %77 by %c511_i32_60 dim 1 : vector<8x512xf32>, i32 -> vector<8x512xf32>
    %c5_61 = arith.constant 5 : index
    %c0_62 = arith.constant 0 : index
    %105 = vector.load %arg3[%c5_61, %c0_62] : memref<9x512xf32, #tpu.memory_space<vmem>>, vector<1x512xf32>
    %106 = vector.broadcast %105 : vector<1x512xf32> to vector<8x512xf32>
    %107 = arith.mulf %104, %106 : vector<8x512xf32>
    %108 = arith.truncf %107 : vector<8x512xf32> to vector<8x512xbf16>
    %c40_63 = arith.constant 40 : index
    %c0_64 = arith.constant 0 : index
    %109 = vector.load %arg10[%c40_63, %c0_64] : memref<80x512xbf16, #tpu.memory_space<vmem>>, vector<8x512xbf16>
    tpu.vector_store %arg10[%c40_63, %c0_64], %108 {strides = array<i32>} : memref<80x512xbf16, #tpu.memory_space<vmem>>, vector<8x512xbf16>,
    %c497_i32_65 = arith.constant 497 : i32
    %110 = tpu.dynamic_rotate %77 by %c497_i32_65 dim 1 : vector<8x512xf32>, i32 -> vector<8x512xf32>
    %c6_66 = arith.constant 6 : index
    %c0_67 = arith.constant 0 : index
    %111 = vector.load %arg3[%c6_66, %c0_67] : memref<9x512xf32, #tpu.memory_space<vmem>>, vector<1x512xf32>
    %112 = vector.broadcast %111 : vector<1x512xf32> to vector<8x512xf32>
    %113 = arith.mulf %110, %112 : vector<8x512xf32>
    %114 = arith.truncf %113 : vector<8x512xf32> to vector<8x512xbf16>
    %c48_68 = arith.constant 48 : index
    %c0_69 = arith.constant 0 : index
    %115 = vector.load %arg10[%c48_68, %c0_69] : memref<80x512xbf16, #tpu.memory_space<vmem>>, vector<8x512xbf16>
    tpu.vector_store %arg10[%c48_68, %c0_69], %114 {strides = array<i32>} : memref<80x512xbf16, #tpu.memory_space<vmem>>, vector<8x512xbf16>,
    %c496_i32_70 = arith.constant 496 : i32
    %116 = tpu.dynamic_rotate %77 by %c496_i32_70 dim 1 : vector<8x512xf32>, i32 -> vector<8x512xf32>
    %c7_71 = arith.constant 7 : index
    %c0_72 = arith.constant 0 : index
    %117 = vector.load %arg3[%c7_71, %c0_72] : memref<9x512xf32, #tpu.memory_space<vmem>>, vector<1x512xf32>
    %118 = vector.broadcast %117 : vector<1x512xf32> to vector<8x512xf32>
    %119 = arith.mulf %116, %118 : vector<8x512xf32>
    %120 = arith.truncf %119 : vector<8x512xf32> to vector<8x512xbf16>
    %c56_73 = arith.constant 56 : index
    %c0_74 = arith.constant 0 : index
    %121 = vector.load %arg10[%c56_73, %c0_74] : memref<80x512xbf16, #tpu.memory_space<vmem>>, vector<8x512xbf16>
    tpu.vector_store %arg10[%c56_73, %c0_74], %120 {strides = array<i32>} : memref<80x512xbf16, #tpu.memory_space<vmem>>, vector<8x512xbf16>,
    %c495_i32_75 = arith.constant 495 : i32
    %122 = tpu.dynamic_rotate %77 by %c495_i32_75 dim 1 : vector<8x512xf32>, i32 -> vector<8x512xf32>
    %c8_76 = arith.constant 8 : index
    %c0_77 = arith.constant 0 : index
    %123 = vector.load %arg3[%c8_76, %c0_77] : memref<9x512xf32, #tpu.memory_space<vmem>>, vector<1x512xf32>
    %124 = vector.broadcast %123 : vector<1x512xf32> to vector<8x512xf32>
    %125 = arith.mulf %122, %124 : vector<8x512xf32>
    %126 = arith.truncf %125 : vector<8x512xf32> to vector<8x512xbf16>
    %c64_78 = arith.constant 64 : index
    %c0_79 = arith.constant 0 : index
    %127 = vector.load %arg10[%c64_78, %c0_79] : memref<80x512xbf16, #tpu.memory_space<vmem>>, vector<8x512xbf16>
    tpu.vector_store %arg10[%c64_78, %c0_79], %126 {strides = array<i32>} : memref<80x512xbf16, #tpu.memory_space<vmem>>, vector<8x512xbf16>,
    %c0_80 = arith.constant 0 : index
    %c0_81 = arith.constant 0 : index
    %128 = vector.load %arg6[%c0_80, %c0_81] : memref<8x80xbf16, #tpu.memory_space<vmem>>, vector<8x80xbf16>
    %c0_82 = arith.constant 0 : index
    %c0_83 = arith.constant 0 : index
    %129 = vector.load %arg10[%c0_82, %c0_83] : memref<80x512xbf16, #tpu.memory_space<vmem>>, vector<80x512xbf16>
    %cst_84 = arith.constant dense<0.000000e+00> : vector<8x512xf32>
    %130 = tpu.matmul %128, %129, %cst_84 {dimension_numbers = #tpu.dot_dimension_numbers<[1], [0], [0], [1], [0, 0, 1, 1], [], []>} : vector<8x80xbf16>, vector<80x512xbf16>, vector<8x512xf32> -> vector<8x512xf32>
    %131 = arith.addf %130, %56 : vector<8x512xf32>
    %c0_85 = arith.constant 0 : index
    %c0_86 = arith.constant 0 : index
    %132 = vector.load %arg9[%c0_85, %c0_86] : memref<8x512xf32, #tpu.memory_space<vmem>>, vector<8x512xf32>
    tpu.vector_store %arg9[%c0_85, %c0_86], %131 {strides = array<i32>} : memref<8x512xf32, #tpu.memory_space<vmem>>, vector<8x512xf32>,
    return
  }
  func.func @transform_0(%arg0: i32) -> (i32, i32) {
    %c0_i32 = arith.constant 0 : i32
    %c0_i32_0 = arith.constant 0 : i32
    %c0_i32_1 = arith.constant 0 : i32
    return %c0_i32, %c0_i32_0 : i32, i32
  }
  func.func @transform_1(%arg0: i32) -> (i32, i32) {
    %c0_i32 = arith.constant 0 : i32
    %c0_i32_0 = arith.constant 0 : i32
    %c0_i32_1 = arith.constant 0 : i32
    return %c0_i32, %c0_i32_0 : i32, i32
  }
  func.func @transform_2(%arg0: i32) -> (i32, i32) {
    %c0_i32 = arith.constant 0 : i32
    %c0_i32_0 = arith.constant 0 : i32
    %c0_i32_1 = arith.constant 0 : i32
    return %c0_i32, %c0_i32_0 : i32, i32
  }
  func.func @transform_3(%arg0: i32) -> (i32, i32) {
    %c0_i32 = arith.constant 0 : i32
    %c0_i32_0 = arith.constant 0 : i32
    %c0_i32_1 = arith.constant 0 : i32
    return %c0_i32, %c0_i32_0 : i32, i32
  }
  func.func @transform_4(%arg0: i32) -> (i32, i32) {
    %c0_i32 = arith.constant 0 : i32
    %c0_i32_0 = arith.constant 0 : i32
    %c0_i32_1 = arith.constant 0 : i32
    return %c0_i32, %c0_i32_0 : i32, i32
  }
  func.func @transform_5(%arg0: i32) -> (i32, i32) {
    %c0_i32 = arith.constant 0 : i32
    %c0_i32_0 = arith.constant 0 : i32
    %c0_i32_1 = arith.constant 0 : i32
    return %c0_i32, %c0_i32_0 : i32, i32
  }
  func.func @transform_6(%arg0: i32) -> (i32, i32) {
    %c0_i32 = arith.constant 0 : i32
    %c0_i32_0 = arith.constant 0 : i32
    %c0_i32_1 = arith.constant 0 : i32
    return %c0_i32, %c0_i32_0 : i32, i32
  }
  func.func @transform_7(%arg0: i32) -> (i32, i32) {
    %c0_i32 = arith.constant 0 : i32
    %c0_i32_0 = arith.constant 0 : i32
    %c0_i32_1 = arith.constant 0 : i32
    return %c0_i32, %c0_i32_0 : i32, i32
  }
  func.func @transform_8(%arg0: i32) -> (i32, i32) {
    %c0_i32 = arith.constant 0 : i32
    %c0_i32_0 = arith.constant 0 : i32
    %c0_i32_1 = arith.constant 0 : i32
    return %c0_i32, %c0_i32_0 : i32, i32
  }
}

</mosaic_0001>

<bundles_post_ra>
// kernel: layer_forward.1
= control target key start
LH: loop header
LB: loop body
LE: loop exit
PB: predicated region body
PF: predicated region fallthrough
CT: control target
= control target key end

     0   :  { %s1595_s9 = smov 1   ;;  %s1596_s10 = smov 127   ;;  %v1602_v38 = vmov 0   ;;  %v82_v41 = vlaneseq  ;;  %vm54_vm4 = vcmask 1040384   ;;  %s2395_s0 = inlined_call_operand.vmem [shape: f32[4,512], index: 0, kind: input, shape index: {}]   ;;  %s2396_s2 = inlined_call_operand.vmem [shape: f32[9,512], index: 2, kind: input, shape index: {}]   ;;  %s2397_s1 = inlined_call_operand.vmem [shape: f32[32,8], index: 1, kind: input, shape index: {}]   ;;  %s2398_s7 = inlined_call_operand.vmem [shape: f32[8,1], index: 7, kind: input, shape index: {}]   ;;  %s2399_s4 = inlined_call_operand.vmem [shape: bf16[8,80], index: 4, kind: input, shape index: {}]   ;;  %s2400_s6 = inlined_call_operand.vmem [shape: f32[8,32], index: 6, kind: input, shape index: {}]   ;;  %s2401_s3 = inlined_call_operand.vmem [shape: f32[8,512], index: 3, kind: input, shape index: {}]   ;;  %s2402_s5 = inlined_call_operand.vmem [shape: bf16[8,80], index: 5, kind: input, shape index: {}]   ;;  %s2403_s8 = inlined_call_operand.vmem [shape: f32[8,512], index: 8, kind: output, shape index: {}]  }
   0x1   :  { %v60_v0 = vld [vmem:[%s2395_s0 + $0x8] sm:$0xff]  ;;  %v1655_v1 = vld [vmem:[%s2395_s0] sm:$0xff]  ;;  %s1594_s0 = smov 15   ;;  %s1597_s11 = smov 113   ;;  %38 = vst [vmem:[#allocation2 + $0x20] sm:$0xff] %v1602_v38  ;;  %1560 = vset.pattern.permute.xlu2 %v1602_v38  ;;  %1561 = vset.pattern.permute.xlu0 %v1602_v38 }
   0x2   :  { %65 = vst [vmem:[#allocation1 + $0x10] ss:$2 sm:$0xff] %v60_v0  ;;  %s1598_s12 = smov 112   ;;  %s1599_s13 = smov 111   ;;  %v1737_v42 = vand.u32 127, %v82_v41 }
   0x3   :  { %63 = vst [vmem:[#allocation1] ss:$2 sm:$0xff] %v1655_v1  ;;  %s1600_s14 = smov 17   ;;  %s1601_s15 = smov 16  }
   0x4   :  { %34 = vst [vmem:[#allocation2] sm:$0xff] %v1602_v38  ;;  %v1742_v43 = vld [vmem:[%s2396_s2 + $0x2] ss:$8 sm:$0xf]  ;;  %vm169_vm0 = vcmp.lt.s32.totalorder %v1737_v42, 15  ;;  %vm212_vm1 = vcmp.lt.s32.totalorder %v1737_v42, 1 }
   0x5   :  { %35 = vst [vmem:[#allocation2 + $0x8] sm:$0xff] %v1602_v38  ;;  %v177_v45 = vperm.slane %v1742_v43, 0  ;;  %v178_v46 = vperm.slane %v1742_v43, 1  ;;  %v1760_v54 = vld [vmem:[%s2396_s2 + $0x3] ss:$8 sm:$0xf] }
   0x6   :  { %36 = vst [vmem:[#allocation2 + $0x10] sm:$0xff] %v1602_v38  ;;  %v220_v56 = vperm.slane %v1760_v54, 0  ;;  %v221_v57 = vperm.slane %v1760_v54, 1  ;;  %vm270_vm2 = vcmp.lt.s32.totalorder %v1737_v42, 127  ;;  %vm313_vm3 = vcmp.lt.s32.totalorder %v1737_v42, 113 }
   0x7   :  { %37 = vst [vmem:[#allocation2 + $0x18] sm:$0xff] %v1602_v38  ;;  %vm356_vm5 = vcmp.lt.s32.totalorder %v1737_v42, 112  ;;  %vm399_vm6 = vcmp.lt.s32.totalorder %v1737_v42, 111  ;;  %vm84_vm7 = vcmp.lt.s32.totalorder %v1737_v42, 17  ;;  %vm2405_vm8 = vcmp.lt.s32.totalorder %v1737_v42, 16 }
   0x8   :  { %39 = vst [vmem:[#allocation2 + $0x28] sm:$0xff] %v1602_v38 }
   0x9   :  { %v1658_v2 = vld.sshfl [vmem:[#allocation1 + $0x10] sm:$0xff pattern:$0x75316420]  ;;  %v1660_v3 = vld.sshfl [vmem:[#allocation1 + $0x18] sm:$0xff pattern:$0x75316420] }
   0xa   :  { %109 = vst [vmem:[#allocation1 + $0x10] ss:$2 sm:$0xff] %v60_v0  ;;  %v1662_v4 = vld.sshfl [vmem:[#allocation1] sm:$0xff pattern:$0x75316420] }
   0xb   :  { %v1664_v5 = vld.sshfl [vmem:[#allocation1 + $0x8] sm:$0xff pattern:$0x75316420]  ;;  %40 = vst [vmem:[#allocation2 + $0x30] sm:$0xff] %v1602_v38 }
   0xc   :  { %107 = vst [vmem:[#allocation1] ss:$2 sm:$0xff] %v1655_v1 }
   0xd   :  { %41 = vst [vmem:[#allocation2 + $0x38] sm:$0xff] %v1602_v38 }
   0xe   :  { %42 = vst [vmem:[#allocation2 + $0x40] sm:$0xff] %v1602_v38 }
   0xf   :  { %43 = vst [vmem:[#allocation2 + $0x48] sm:$0xff] %v1602_v38 }
  0x10   :  { %44 = vst [vmem:[#allocation2 + $0x50] sm:$0xff] %v1602_v38 }
  0x11   :  { %v1667_v6 = vld.sshfl [vmem:[#allocation1 + $0x10] sm:$0xff pattern:$0x75316420]  ;;  %v1669_v7 = vld.sshfl [vmem:[#allocation1 + $0x18] sm:$0xff pattern:$0x75316420] }
  0x12   :  { %152 = vst [vmem:[#allocation1 + $0x10] ss:$2 sm:$0xff] %v60_v0 }
  0x13   :  { %v1671_v8 = vld.sshfl [vmem:[#allocation1] sm:$0xff pattern:$0x75316420]  ;;  %v1673_v9 = vld.sshfl [vmem:[#allocation1 + $0x8] sm:$0xff pattern:$0x75316420] }
  0x14   :  { %150 = vst [vmem:[#allocation1] ss:$2 sm:$0xff] %v1655_v1 }
  0x15   :  { %45 = vst [vmem:[#allocation2 + $0x58] sm:$0xff] %v1602_v38 }
  0x16   :  { %46 = vst [vmem:[#allocation2 + $0x60] sm:$0xff] %v1602_v38 }
  0x17   :  { %47 = vst [vmem:[#allocation2 + $0x68] sm:$0xff] %v1602_v38 }
  0x18   :  { %48 = vst [vmem:[#allocation2 + $0x70] sm:$0xff] %v1602_v38 }
  0x19   :  { %v156_v10 = vld.sshfl [vmem:[#allocation1 + $0x18] sm:$0xff pattern:$0x75316420]  ;;  %v1676_v11 = vld.sshfl [vmem:[#allocation1 + $0x10] sm:$0xff pattern:$0x75316420] }
  0x1a   :  { %167 = vrot.lane.b32.xlu2 %v156_v10, %s1594_s0  ;;  %195 = vst [vmem:[#allocation1 + $0x10] ss:$2 sm:$0xff] %v60_v0 }
  0x1b   :  { %v154_v12 = vld.sshfl [vmem:[#allocation1 + $0x8] sm:$0xff pattern:$0x75316420]  ;;  %v153_v13 = vld.sshfl [vmem:[#allocation1] sm:$0xff pattern:$0x75316420] }
  0x1c   :  { %163 = vrot.lane.b32.xlu1 %v154_v12, %s1594_s0  ;;  %161 = vrot.lane.b32.xlu0 %v153_v13, %s1594_s0  ;;  %193 = vst [vmem:[#allocation1] ss:$2 sm:$0xff] %v1655_v1 }
  0x1d   :  { %49 = vst [vmem:[#allocation2 + $0x78] sm:$0xff] %v1602_v38 }
  0x1e   :  { %50 = vst [vmem:[#allocation2 + $0x80] sm:$0xff] %v1602_v38 }
  0x1f   :  { %51 = vst [vmem:[#allocation2 + $0x88] sm:$0xff] %v1602_v38 }
  0x21   :  { %v199_v14 = vld.sshfl [vmem:[#allocation1 + $0x18] sm:$0xff pattern:$0x75316420]  ;;  %v198_v15 = vld.sshfl [vmem:[#allocation1 + $0x10] sm:$0xff pattern:$0x75316420] }
  0x22   :  { %210 = vrot.lane.b32.xlu2 %v199_v14, %s1595_s9  ;;  %238 = vst [vmem:[#allocation1 + $0x10] ss:$2 sm:$0xff] %v60_v0 }
  0x23   :  { %v197_v16 = vld.sshfl [vmem:[#allocation1 + $0x8] sm:$0xff pattern:$0x75316420]  ;;  %v196_v17 = vld.sshfl [vmem:[#allocation1] sm:$0xff pattern:$0x75316420] }
  0x24   :  { %206 = vrot.lane.b32.xlu1 %v197_v16, %s1595_s9  ;;  %204 = vrot.lane.b32.xlu0 %v196_v17, %s1595_s9  ;;  %236 = vst [vmem:[#allocation1] ss:$2 sm:$0xff] %v1655_v1 }
  0x29   :  { %v1686_v18 = vld.sshfl [vmem:[#allocation1 + $0x10] sm:$0xff pattern:$0x75316420]  ;;  %v1688_v19 = vld.sshfl [vmem:[#allocation1 + $0x18] sm:$0xff pattern:$0x75316420] }
  0x2a   :  { %253 = vst [vmem:[#allocation1 + $0x10] ss:$2 sm:$0xff] %v60_v0 }
  0x2b   :  { %v1690_v20 = vld.sshfl [vmem:[#allocation1] sm:$0xff pattern:$0x75316420]  ;;  %v1692_v21 = vld.sshfl [vmem:[#allocation1 + $0x8] sm:$0xff pattern:$0x75316420] }
  0x2c   :  { %251 = vst [vmem:[#allocation1] ss:$2 sm:$0xff] %v1655_v1  ;;  %v247_v55 = vpack.c.bf16 %v1692_v21, %v1690_v20 }
  0x2e   :  { %249 = vst [vmem:[#allocation2 + $0x40] sm:$0x33] %v247_v55 }
  0x31   :  { %v256_v22 = vld.sshfl [vmem:[#allocation1 + $0x10] sm:$0xff pattern:$0x75316420]  ;;  %v257_v23 = vld.sshfl [vmem:[#allocation1 + $0x18] sm:$0xff pattern:$0x75316420] }
  0x32   :  { %266 = vrot.lane.b32.xlu2 %v256_v22, %s1596_s10  ;;  %296 = vst [vmem:[#allocation1 + $0x10] ss:$2 sm:$0xff] %v60_v0 }
  0x33   :  { %v255_v24 = vld.sshfl [vmem:[#allocation1 + $0x8] sm:$0xff pattern:$0x75316420]  ;;  %v254_v25 = vld.sshfl [vmem:[#allocation1] sm:$0xff pattern:$0x75316420] }
  0x34   :  { %264 = vrot.lane.b32.xlu1 %v255_v24, %s1596_s10  ;;  %262 = vrot.lane.b32.xlu0 %v254_v25, %s1596_s10  ;;  %294 = vst [vmem:[#allocation1] ss:$2 sm:$0xff] %v1655_v1 }
  0x39   :  { %v299_v26 = vld.sshfl [vmem:[#allocation1 + $0x10] sm:$0xff pattern:$0x75316420]  ;;  %v300_v27 = vld.sshfl [vmem:[#allocation1 + $0x18] sm:$0xff pattern:$0x75316420] }
  0x3a   :  { %339 = vst [vmem:[#allocation1 + $0x10] ss:$2 sm:$0xff] %v60_v0 }
  0x3b   :  { %v298_v28 = vld.sshfl [vmem:[#allocation1 + $0x8] sm:$0xff pattern:$0x75316420]  ;;  %v297_v29 = vld.sshfl [vmem:[#allocation1] sm:$0xff pattern:$0x75316420] }
  0x3c   :  { %307 = vrot.lane.b32.xlu2 %v298_v28, %s1597_s11  ;;  %305 = vrot.lane.b32.xlu1 %v297_v29, %s1597_s11  ;;  %337 = vst [vmem:[#allocation1] ss:$2 sm:$0xff] %v1655_v1  ;;  %v1320_v28 = vld [vmem:[%s2396_s2 + $0x7] ss:$8 sm:$0xf] }
  0x3d   :  { %v367_v55 = vperm.slane %v1320_v28, 3 }
  0x41   :  { %v342_v30 = vld.sshfl [vmem:[#allocation1 + $0x10] sm:$0xff pattern:$0x75316420]  ;;  %v343_v31 = vld.sshfl [vmem:[#allocation1 + $0x18] sm:$0xff pattern:$0x75316420] }
  0x42   :  { %382 = vst [vmem:[#allocation1 + $0x10] ss:$2 sm:$0xff] %v60_v0 }
  0x43   :  { %v341_v32 = vld.sshfl [vmem:[#allocation1 + $0x8] sm:$0xff pattern:$0x75316420]  ;;  %v340_v33 = vld.sshfl [vmem:[#allocation1] sm:$0xff pattern:$0x75316420] }
  0x44   :  { %309 = vrot.lane.b32.xlu2 %v299_v26, %s1597_s11  ;;  %350 = vrot.lane.b32.xlu1 %v341_v32, %s1598_s12  ;;  %380 = vst [vmem:[#allocation1] ss:$2 sm:$0xff] %v1655_v1 }
  0x45   :  { %348 = vrot.lane.b32.xlu0 %v340_v33, %s1598_s12 }
  0x49   :  { %v385_v34 = vld.sshfl [vmem:[#allocation1 + $0x10] sm:$0xff pattern:$0x75316420]  ;;  %v386_v37 = vld.sshfl [vmem:[#allocation1 + $0x18] sm:$0xff pattern:$0x75316420] }
  0x4b   :  { %v383_v35 = vld.sshfl [vmem:[#allocation1] sm:$0xff pattern:$0x75316420]  ;;  %v384_v36 = vld.sshfl [vmem:[#allocation1 + $0x8] sm:$0xff pattern:$0x75316420] }
  0x4c   :  { %352 = vrot.lane.b32.xlu2 %v342_v30, %s1598_s12  ;;  %395 = vrot.lane.b32.xlu1 %v385_v34, %s1599_s13  ;;  %v365_v30 = vperm.slane %v1320_v28, 1  ;;  %v1820_v34 = vld [vmem:[%s2397_s1 + $0x18] sm:$0xff] }
  0x4d   :  { %391 = vrot.lane.b32.xlu0 %v383_v35, %s1599_s13  ;;  %v1825_v35 = vld [vmem:[%s2397_s1 + $0x10] sm:$0xff] }
  0x54   :  { %80 = vrot.lane.b32.xlu2 %v1660_v3, %s1600_s14  ;;  %76 = vrot.lane.b32.xlu1 %v1664_v5, %s1600_s14  ;;  %v1780_v3 = vld [vmem:[%s2396_s2 + $0x5] ss:$8 sm:$0xf] }
  0x55   :  { %393 = vrot.lane.b32.xlu0 %v384_v36, %s1599_s13  ;;  %v278_v5 = vperm.slane %v1780_v3, 0 }
  0x5c   :  { %124 = vrot.lane.b32.xlu2 %v1669_v7, %s1601_s15  ;;  %120 = vrot.lane.b32.xlu1 %v1673_v9, %s1601_s15 }
  0x5d   :  { %74 = vrot.lane.b32.xlu0 %v1662_v4, %s1600_s14  ;;  %v279_v4 = vperm.slane %v1780_v3, 1 }
  0x64   :  { %354 = vrot.lane.b32.xlu2 %v343_v31, %s1598_s12  ;;  %311 = vrot.lane.b32.xlu1 %v300_v27, %s1597_s11  ;;  %v364_v31 = vperm.slane %v1320_v28, 0 }
  0x65   :  { %118 = vrot.lane.b32.xlu0 %v1671_v8, %s1601_s15  ;;  %v1788_v8 = vld [vmem:[%s2396_s2 + $0x6] ss:$8 sm:$0xf] }
  0x66   :  { %v322_v14 = vperm.slane %v1788_v8, 1  ;;  %v321_v22 = vperm.slane %v1788_v8, 0 }
  0x6c   :  { %208 = vrot.lane.b32.xlu2 %v198_v15, %s1595_s9  ;;  %165 = vrot.lane.b32.xlu1 %v1676_v11, %s1594_s0  ;;  %v1603_v15 = vmov 0.0  }
  0x6d   :  { %397 = vrot.lane.b32.xlu0 %v386_v37, %s1599_s13  ;;  %v55_v16 = vsel %vm54_vm4, 1.0, %v1603_v15 }
  0x6e   :  { %v56_v21 = vpack.c.bf16 %v55_v16, %v55_v16 }
  0x70   :  { %57 = vst [vmem:[#allocation2 + $0x90] sm:$0xff] %v56_v21 }
  0x71   :  { %58 = vst [vmem:[#allocation2 + $0x98] sm:$0xff] %v56_v21 }
  0x74   :  { %122 = vrot.lane.b32.xlu1 %v1667_v6, %s1601_s15  ;;  %v1731_v39 = vpop.permute.xlu2 %167 }
  0x75   :  { %268 = vrot.lane.b32.xlu0 %v257_v23, %s1596_s10 }
  0x7c   :  { %v1735_v40 = vpop.permute.xlu2 %210 }
  0x7d   :  { %78 = vrot.lane.b32.xlu0 %v1658_v2, %s1600_s14 }
  0x8c   :  { %v1744_v44 = vpop.permute.xlu2 %266 }
  0x8e   :  { %v1749_v47 = vpop.permute.xlu1 %163  ;;  %v162_v48 = vpop.permute.xlu0 %161 }
  0x8f   :  { %v172_v49 = vsel %vm169_vm0, %v162_v48, %v1749_v47  ;;  %v173_v50 = vsel %vm169_vm0, %v1731_v39, %v162_v48  ;;  %v1836_v48 = vld [vmem:[%s2397_s1 + $0x8] sm:$0xff] }
  0x90   :  { %v185_v51 = vmul.f32 %v177_v45, %v173_v50  ;;  %v186_v52 = vmul.f32 %v178_v46, %v172_v49  ;;  %v1409_v45 = vmul.f32 -1.442695, %v1820_v34  ;;  %v1408_v46 = vmul.f32 -1.442695, %v1825_v35 }
  0x91   :  { %v1407_v50 = vmul.f32 -1.442695, %v1836_v48 }
  0x92   :  { %v189_v53 = vpack.c.bf16 %v186_v52, %v185_v51  ;;  %1562 = vpow2.f32 %v1409_v45  ;;  %v1842_v51 = vld [vmem:[%s2397_s1] sm:$0xff] }
  0x93   :  { %1564 = vpow2.f32 %v1408_v46  ;;  %v1901_v46 = vld [vmem:[#allocation2 + $0x40] sm:$0xf] }
  0x94   :  { %191 = vst [vmem:[#allocation2 + $0x20] sm:$0x33] %v189_v53  ;;  %v366_v53 = vperm.slane %v1320_v28, 2  ;;  %1566 = vpow2.f32 %v1407_v50 }
  0x96   :  { %v308_v58 = vpop.permute.xlu2 %307  ;;  %v1767_v59 = vpop.permute.xlu1 %206 }
  0x97   :  { %v205_v60 = vpop.permute.xlu0 %204 }
  0x98   :  { %v215_v61 = vsel %vm212_vm1, %v205_v60, %v1767_v59  ;;  %v216_v62 = vsel %vm212_vm1, %v1735_v40, %v205_v60 }
  0x99   :  { %v228_v63 = vmul.f32 %v220_v56, %v216_v62  ;;  %v229_v0 = vmul.f32 %v221_v57, %v215_v61  ;;  %v1406_v56 = vmul.f32 -1.442695, %v1842_v51 }
  0x9b   :  { %v232_v1 = vpack.c.bf16 %v229_v0, %v228_v63  ;;  %v1563_v63 = vpop.eup %1562  ;;  %1568 = vpow2.f32 %v1406_v56  ;;  %v1905_v50 = vld [vmem:[#allocation2 + $0x24] sm:$0xf] }
  0x9d   :  { %234 = vst [vmem:[#allocation2 + $0x30] sm:$0x33] %v232_v1 }
  0x9e   :  { %v1775_v2 = vpop.permute.xlu2 %309 }
  0x9f   :  { %v315_v17 = vsel %vm313_vm3, %v308_v58, %v1775_v2 }
  0xa0   :  { %v330_v23 = vmul.f32 %v322_v14, %v315_v17 }
  0xa6   :  { %v265_v6 = vpop.permute.xlu1 %264  ;;  %v353_v7 = vpop.permute.xlu2 %352 }
  0xa7   :  { %v272_v9 = vsel %vm270_vm2, %v265_v6, %v1744_v44  ;;  %v1793_v10 = vpop.permute.xlu0 %262 }
  0xa8   :  { %v287_v11 = vmul.f32 %v279_v4, %v272_v9  ;;  %v273_v12 = vsel %vm270_vm2, %v1793_v10, %v265_v6  ;;  %v1565_v4 = vpop.eup %1564  ;;  %v1858_v9 = vld [vmem:[%s2396_s2 + $0x20] ss:$8 sm:$0xf] }
  0xa9   :  { %v286_v13 = vmul.f32 %v278_v5, %v273_v12  ;;  %v1853_v5 = vadd.f32 1.0, %v1563_v63  ;;  %v222_v12 = vperm.slane %v1760_v54, 2  ;;  %v407_v14 = vperm.slane %v1858_v9, 0 }
  0xaa   :  { %v408_v15 = vperm.slane %v1858_v9, 1 }
  0xab   :  { %v290_v20 = vpack.c.bf16 %v287_v11, %v286_v13  ;;  %v1860_v11 = vadd.f32 1.0, %v1565_v4  ;;  %1570 = vrcp.f32 %v1853_v5  ;;  %v223_v13 = vperm.slane %v1760_v54, 3  ;;  %v1928_v4 = vld [vmem:[#allocation2 + $0x44] sm:$0xf] }
  0xac   :  { %vm670_vm9 = vweird.f32 %v1853_v5 }
  0xad   :  { %292 = vst [vmem:[#allocation2 + $0x50] sm:$0x33] %v290_v20  ;;  %1572 = vrcp.f32 %v1860_v11  ;;  %vm655_vm13 = vweird.f32 %v1860_v11 }
  0xae   :  { %v1804_v24 = vpop.permute.xlu2 %80  ;;  %v1806_v25 = vpop.permute.xlu1 %305 }
  0xaf   :  { %v316_v26 = vsel %vm313_vm3, %v1806_v25, %v308_v58 }
  0xb0   :  { %v329_v27 = vmul.f32 %v321_v22, %v316_v26 }
  0xb2   :  { %v333_v29 = vpack.c.bf16 %v330_v23, %v329_v27 }
  0xb4   :  { %335 = vst [vmem:[#allocation2 + $0x60] sm:$0x33] %v333_v29 }
  0xb6   :  { %v1815_v32 = vpop.permute.xlu2 %124  ;;  %v351_v33 = vpop.permute.xlu1 %350 }
  0xb7   :  { %v358_v36 = vsel %vm356_vm5, %v351_v33, %v353_v7  ;;  %v349_v37 = vpop.permute.xlu0 %348 }
  0xb8   :  { %v373_v38 = vmul.f32 %v365_v30, %v358_v36  ;;  %v359_v41 = vsel %vm356_vm5, %v349_v37, %v351_v33 }
  0xb9   :  { %v372_v49 = vmul.f32 %v364_v31, %v359_v41 }
  0xbb   :  { %v376_v52 = vpack.c.bf16 %v373_v38, %v372_v49  ;;  %v1903_v49 = vld [vmem:[#allocation2 + $0x2c] sm:$0xf0] }
  0xbd   :  { %378 = vst [vmem:[#allocation2 + $0x70] sm:$0x33] %v376_v52  ;;  %v248_v52 = vpack.c.bf16 %v1688_v19, %v1686_v18  ;;  %v1922_v18 = vld [vmem:[%s2396_s2 + $0x1] ss:$8 sm:$0xf] }
  0xbe   :  { %v355_v57 = vpop.permute.xlu2 %354  ;;  %v1845_v58 = vpop.permute.xlu1 %395 }
  0xbf   :  { %v357_v60 = vsel %vm356_vm5, %v353_v7, %v355_v57  ;;  %v360_v61 = vsel %vm356_vm5, %v355_v57, %v349_v37  ;;  %v1851_v62 = vpop.permute.xlu0 %391  ;;  %v1567_v7 = vpop.eup %1566  ;;  %v1894_v37 = vld [vmem:[#allocation2 + $0x20] sm:$0xf]  ;;  %v1914_v57 = vld [vmem:[#allocation2 + $0x4c] sm:$0xf0]  ;;  %250 = vst [vmem:[#allocation2 + $0x48] sm:$0x33] %v248_v52 }
  0xc0   :  { %v374_v0 = vmul.f32 %v366_v53, %v357_v60  ;;  %v375_v1 = vmul.f32 %v367_v55, %v360_v61  ;;  %v1569_v16 = vpop.eup %1568  ;;  %v1871_v21 = vadd.f32 1.0, %v1567_v7  ;;  %v1910_v53 = vld [vmem:[#allocation2 + $0x30] sm:$0xf0] }
  0xc1   :  { %v1885_v30 = vpop.eup %1570 }
  0xc2   :  { %v377_v6 = vpack.c.bf16 %v375_v1, %v374_v0  ;;  %v666_v38 = vmul.f32 %v1885_v30, %v1853_v5  ;;  %1574 = vrcp.f32 %v1871_v21  ;;  %v1899_v41 = vpop.eup %1572  ;;  %v323_v0 = vperm.slane %v1788_v8, 2 }
  0xc3   :  { %v651_v61 = vmul.f32 %v1899_v41, %v1860_v11  ;;  %v324_v1 = vperm.slane %v1788_v8, 3  ;;  %vm671_vm10 = vweird.f32 %v1885_v30  ;;  %vm656_vm14 = vweird.f32 %v1899_v41 }
  0xc4   :  { %379 = vst [vmem:[#allocation2 + $0x78] sm:$0x33] %v377_v6  ;;  %v667_v19 = vsub.f32 1.0, %v666_v38  ;;  %v1930_v6 = vld [vmem:[#allocation2 + $0x50] sm:$0xf0]  ;;  %vm1978_vm11 = vmor %vm670_vm9, %vm671_vm10  ;;  %vm640_vm4 = vweird.f32 %v1871_v21 }
  0xc5   :  { %vm2007_vm10 = vmor %vm655_vm13, %vm656_vm14 }
  0xc6   :  { %v209_v17 = vpop.permute.xlu2 %208  ;;  %v1869_v20 = vpop.permute.xlu1 %76  ;;  %v668_v38 = vmul.f32 %v1885_v30, %v667_v19 }
  0xc7   :  { %v213_v22 = vsel %vm212_vm1, %v209_v17, %v1735_v40  ;;  %v214_v54 = vsel %vm212_vm1, %v1767_v59, %v209_v17  ;;  %v394_v23 = vpop.permute.xlu0 %393  ;;  %v1887_v40 = vadd.f32 1.0, %v1569_v16  ;;  %v1892_v59 = vld [vmem:[%s2396_s2] ss:$8 sm:$0xf]  ;;  %v1390_v16 = vld [vmem:[#allocation2 + $0x90] sm:$0xf0] }
  0xc8   :  { %v230_v26 = vmul.f32 %v222_v12, %v214_v54  ;;  %v231_v27 = vmul.f32 %v223_v13, %v213_v22  ;;  %v401_v28 = vsel %vm399_vm6, %v394_v23, %v1845_v58  ;;  %v402_v29 = vsel %vm399_vm6, %v1851_v62, %v394_v23  ;;  %v1936_v13 = vpop.eup %1574 }
  0xc9   :  { %v415_v31 = vmul.f32 %v407_v14, %v402_v29  ;;  %v416_v33 = vmul.f32 %v408_v15, %v401_v28  ;;  %v91_v55 = vperm.slane %v1892_v59, 0  ;;  %v92_v56 = vperm.slane %v1892_v59, 1  ;;  %v1528_v15 = vld [vmem:[#allocation2 + $0x8c] sm:$0xf0]  ;;  %v1522_v29 = vld [vmem:[#allocation2 + $0x64] sm:$0xf] }
  0xca   :  { %v233_v36 = vpack.c.bf16 %v231_v27, %v230_v26  ;;  %1576 = vrcp.f32 %v1887_v40  ;;  %v134_v23 = vperm.slane %v1922_v18, 0  ;;  %v135_v26 = vperm.slane %v1922_v18, 1  ;;  %v1372_v27 = vld [vmem:[#allocation2 + $0x60] sm:$0xf]  ;;  %v1524_v28 = vld [vmem:[#allocation2 + $0x6c] sm:$0xf0] }
  0xcb   :  { %v419_v45 = vpack.c.bf16 %v416_v33, %v415_v31  ;;  %v1374_v31 = vld [vmem:[#allocation2 + $0x70] sm:$0xf0]  ;;  %v1373_v7 = vor.u32 %v1524_v28, %v1372_v27  ;;  %v410_v33 = vperm.slane %v1858_v9, 3  ;;  %vm641_vm9 = vweird.f32 %v1936_v13 }
  0xcc   :  { %235 = vst [vmem:[#allocation2 + $0x38] sm:$0x33] %v233_v36  ;;  %v674_v36 = vand.u32 2147483647, %v1853_v5  ;;  %vm2046_vm13 = vmor %vm640_vm4, %vm641_vm9 }
  0xcd   :  { %421 = vst [vmem:[#allocation2 + $0x80] sm:$0x33] %v419_v45  ;;  %v652_v45 = vsub.f32 1.0, %v651_v61 }
  0xce   :  { %v1917_v60 = vpop.permute.xlu1 %120  ;;  %vm675_vm12 = vcmp.eq.f32.partialorder %v674_v36, 8.507059e+37 }
  0xcf   :  { %v75_v63 = vpop.permute.xlu0 %74  ;;  %v653_v17 = vmul.f32 %v1899_v41, %v652_v45 }
  0xd0   :  { %v87_v14 = vsel %vm84_vm7, %v75_v63, %v1869_v20  ;;  %v88_v8 = vsel %vm84_vm7, %v1804_v24, %v75_v63  ;;  %v1953_v52 = vpop.eup %1576  ;;  %v669_v63 = vadd.f32 %v1885_v30, %v668_v38 }
  0xd1   :  { %v99_v22 = vmul.f32 %v91_v55, %v88_v8  ;;  %v100_v54 = vmul.f32 %v92_v56, %v87_v14  ;;  %v636_v14 = vmul.f32 %v1936_v13, %v1871_v21  ;;  %v621_v27 = vmul.f32 %v1953_v52, %v1887_v40 }
  0xd3   :  { %v103_v55 = vpack.c.bf16 %v100_v54, %v99_v22  ;;  %v1377_v22 = vor.u32 %v1522_v29, %v1374_v31  ;;  %v676_v54 = vand.u32 2147483648, %v1853_v5  ;;  %v659_v29 = vand.u32 2147483647, %v1860_v11 }
  0xd4   :  { %v1388_v8 = vld [vmem:[#allocation2 + $0x80] sm:$0xf]  ;;  %v1526_v12 = vld [vmem:[#allocation2 + $0x84] sm:$0xf]  ;;  %v637_v31 = vsub.f32 1.0, %v636_v14  ;;  %v673_v14 = vsel %vm1978_vm11, %v1885_v30, %v669_v63  ;;  %vm625_vm11 = vweird.f32 %v1887_v40 }
  0xd5   :  { %105 = vst [vmem:[#allocation2] sm:$0x33] %v103_v55  ;;  %v1389_v19 = vor.u32 %v1528_v15, %v1388_v8  ;;  %v1393_v61 = vor.u32 %v1526_v12, %v1390_v16  ;;  %v677_v5 = vor.u32 1.1754944e-38, %v676_v54  ;;  %v661_v8 = vand.u32 2147483648, %v1860_v11 }
  0xd6   :  { %v312_v56 = vpop.permute.xlu1 %311  ;;  %v654_v54 = vadd.f32 %v1899_v41, %v653_v17  ;;  %vm1999_vm15 = vcmp.eq.f32.partialorder %v659_v29, 8.507059e+37  ;;  %v644_v17 = vand.u32 2147483647, %v1871_v21  ;;  %v2412_v16 = vor.u32 %v1914_v57, %v1901_v46 }
  0xd7   :  { %v314_v28 = vsel %vm313_vm3, %v1775_v2, %v312_v56  ;;  %v317_v12 = vsel %vm313_vm3, %v312_v56, %v1806_v25  ;;  %551 = vmatpush.bf16.msra.mxu0 %v1389_v19  ;;  %564 = vmatpush.bf16.msra.mxu1 %v1393_v61  ;;  %v119_v15 = vpop.permute.xlu0 %118  ;;  %v137_v61 = vperm.slane %v1922_v18, 3  ;;  %v662_v36 = vor.u32 1.1754944e-38, %v661_v8 }
  0xd8   :  { %v331_v38 = vmul.f32 %v323_v0, %v314_v28  ;;  %v332_v2 = vmul.f32 %v324_v1, %v317_v12  ;;  %v129_v25 = vsel %vm2405_vm8, %v119_v15, %v1917_v60  ;;  %v130_v45 = vsel %vm2405_vm8, %v1815_v32, %v119_v15 }
  0xd9   :  { %v142_v55 = vmul.f32 %v134_v23, %v130_v45  ;;  %v143_v56 = vmul.f32 %v135_v26, %v129_v25  ;;  %v622_v0 = vsub.f32 1.0, %v621_v27  ;;  %v638_v23 = vmul.f32 %v1936_v13, %v637_v31 }
  0xda   :  { %v334_v19 = vpack.c.bf16 %v332_v2, %v331_v38  ;;  %v136_v26 = vperm.slane %v1922_v18, 2  ;;  %v646_v27 = vand.u32 2147483648, %v1871_v21  ;;  %v2413_v29 = vor.u32 %v1928_v4, %v1930_v6  ;;  %v1529_v18 = vld [vmem:[#allocation2 + $0x94] sm:$0xf0]  ;;  %v1382_v4 = vld [vmem:[#allocation2 + $0x78] sm:$0xf0] }
  0xdb   :  { %v146_v1 = vpack.c.bf16 %v143_v56, %v142_v55  ;;  %552 = vmatpush.bf16.msra.mxu0 %v1373_v7  ;;  %565 = vmatpush.bf16.msra.mxu1 %v1377_v22  ;;  %v678_v7 = vsel %vm675_vm12, %v677_v5, %v673_v14  ;;  %v623_v28 = vmul.f32 %v1953_v52, %v622_v0  ;;  %vm626_vm12 = vweird.f32 %v1953_v52 }
  0xdc   :  { %336 = vst [vmem:[#allocation2 + $0x68] sm:$0x33] %v334_v19  ;;  %v639_v31 = vadd.f32 %v1936_v13, %v638_v23  ;;  %v2414_v38 = vperm.slane %v1742_v43, 2  ;;  %v2415_v2 = vperm.slane %v1742_v43, 3  ;;  %v2418_v43 = vperm.slane %v1858_v9, 2  ;;  %vm2074_vm4 = vmor %vm625_vm11, %vm626_vm12 }
  0xdd   :  { %148 = vst [vmem:[#allocation2 + $0x10] sm:$0x33] %v146_v1  ;;  %v647_v56 = vor.u32 1.1754944e-38, %v646_v27  ;;  %v624_v21 = vadd.f32 %v1953_v52, %v623_v28  ;;  %v629_v5 = vand.u32 2147483647, %v1887_v40  ;;  %v2419_v19 = vor.u32 %v1903_v49, %v1894_v37 }
  0xde   :  { %v166_v63 = vpop.permute.xlu1 %165  ;;  %v2420_v9 = vor.u32 %v1905_v50, %v1910_v53  ;;  %v1510_v14 = vld [vmem:[#allocation2 + $0x4] sm:$0xf]  ;;  %v643_v0 = vsel %vm2046_vm13, %v1936_v13, %v639_v31  ;;  %vm645_vm14 = vcmp.eq.f32.partialorder %v644_v17, 8.507059e+37  ;;  %v683_v53 = vmul.f32 %v678_v7, %v1820_v34  ;;  %v2098_v7 = vld [vmem:[%s2399_s4] sm:$0xf] }
  0xdf   :  { %v170_v12 = vsel %vm169_vm0, %v166_v63, %v1731_v39  ;;  %v171_v11 = vsel %vm169_vm0, %v1749_v47, %v166_v63  ;;  %v398_v15 = vpop.permute.xlu0 %397  ;;  %553 = vmatpush.bf16.msra.mxu0 %v2412_v16  ;;  %566 = vmatpush.bf16.msra.mxu1 %v2413_v29  ;;  %v685_v39 = vld [vmem:[%s2398_s7] sm:$0xff]  ;;  %v281_v13 = vperm.slane %v1780_v3, 3  ;;  %v628_v17 = vsel %vm2074_vm4, %v1953_v52, %v624_v21 }
  0xe0   :  { %v187_v47 = vmul.f32 %v2414_v38, %v171_v11  ;;  %v188_v25 = vmul.f32 %v2415_v2, %v170_v12  ;;  %v400_v46 = vsel %vm399_vm6, %v1845_v58, %v398_v15  ;;  %v403_v57 = vsel %vm399_vm6, %v398_v15, %v1851_v62  ;;  %688 = vperm.xlu2 %1560, %v685_v39  }
  0xe1   :  { %v417_v6 = vmul.f32 %v2418_v43, %v400_v46  ;;  %v418_v45 = vmul.f32 %v410_v33, %v403_v57  ;;  %v658_v58 = vsel %vm2007_vm10, %v1899_v41, %v654_v54  ;;  %v631_v62 = vand.u32 2147483648, %v1887_v40  ;;  %v1324_v41 = vld [vmem:[#allocation2] sm:$0xf]  ;;  %v1525_v57 = vld [vmem:[#allocation2 + $0x74] sm:$0xf0] }
  0xe2   :  { %v190_v55 = vpack.c.bf16 %v188_v25, %v187_v47  ;;  %v280_v33 = vperm.slane %v1780_v3, 2  ;;  %v663_v1 = vsel %vm1999_vm15, %v662_v36, %v658_v58  ;;  %v648_v40 = vsel %vm645_vm14, %v647_v56, %v643_v0  ;;  %v1364_v58 = vld [vmem:[#allocation2 + $0x48] sm:$0xf] }
  0xe3   :  { %v420_v8 = vpack.c.bf16 %v418_v45, %v417_v6  ;;  %554 = vmatpush.bf16.msra.mxu0 %v2419_v19  ;;  %567 = vmatpush.bf16.msra.mxu1 %v2420_v9  ;;  %v632_v63 = vor.u32 1.1754944e-38, %v631_v62  ;;  %vm2085_vm9 = vcmp.eq.f32.partialorder %v629_v5, 8.507059e+37  ;;  %vm2404_vm15 = vcmask 654336   ;;  %v1380_v47 = vld [vmem:[#allocation2 + $0x68] sm:$0xf] }
  0xe4   :  { %192 = vst [vmem:[#allocation2 + $0x28] sm:$0x33] %v190_v55  ;;  %v1512_v49 = vld [vmem:[#allocation2 + $0xc] sm:$0xf0]  ;;  %v1326_v50 = vld [vmem:[#allocation2 + $0x10] sm:$0xf0]  ;;  %v682_v52 = vmul.f32 %v663_v1, %v1825_v35  ;;  %v681_v15 = vmul.f32 %v648_v40, %v1836_v48 }
  0xe5   :  { %422 = vst [vmem:[#allocation2 + $0x88] sm:$0x33] %v420_v8  ;;  %v1325_v23 = vor.u32 %v1512_v49, %v1324_v41  ;;  %v1329_v54 = vor.u32 %v1510_v14, %v1326_v50  ;;  %v633_v35 = vsel %vm2085_vm9, %v632_v63, %v628_v17  ;;  %v93_v39 = vperm.slane %v1892_v59, 2  ;;  %v1523_v2 = vld [vmem:[#allocation2 + $0x6c] sm:$0xf]  ;;  %v718_v63 = vld [vmem:[%s2401_s3 + $0x18] sm:$0xff] }
  0xe6   :  { %v123_v22 = vpop.permute.xlu1 %122  ;;  %v680_v29 = vmul.f32 %v633_v35, %v1842_v51  ;;  %v94_v38 = vperm.slane %v1892_v59, 3  ;;  %v1381_v59 = vor.u32 %v1525_v57, %v1380_v47  ;;  %v1385_v45 = vor.u32 %v1523_v2, %v1382_v4  ;;  %v1519_v62 = vld [vmem:[#allocation2 + $0x4c] sm:$0xf]  ;;  %v1517_v9 = vld [vmem:[#allocation2 + $0x34] sm:$0xf0] }
  0xe7   :  { %v127_v34 = vsel %vm2405_vm8, %v123_v22, %v1815_v32  ;;  %v128_v3 = vsel %vm2405_vm8, %v1917_v60, %v123_v22  ;;  %v269_v30 = vpop.permute.xlu0 %268  ;;  %555 = vmatpush.bf16.msra.mxu0 %v1325_v23  ;;  %568 = vmatpush.bf16.msra.mxu1 %v1329_v54  ;;  %vm691_vm10 = vcmask 261120   ;;  %v716_v23 = vld [vmem:[%s2401_s3 + $0x8] sm:$0xff]  ;;  %v717_v54 = vld [vmem:[%s2401_s3 + $0x10] sm:$0xff]  ;;  %vm719_vm11 = vcmask 64512  }
  0xe8   :  { %v144_v36 = vmul.f32 %v136_v26, %v128_v3  ;;  %v145_v32 = vmul.f32 %v137_v61, %v127_v34  ;;  %v271_v60 = vsel %vm270_vm2, %v1744_v44, %v269_v30  ;;  %v274_v28 = vsel %vm270_vm2, %v269_v30, %v1793_v10  ;;  %v1398_v61 = vld [vmem:[#allocation2 + $0x98] sm:$0xf0] }
  0xe9   :  { %v288_v12 = vmul.f32 %v280_v33, %v271_v60  ;;  %v289_v11 = vmul.f32 %v281_v13, %v274_v28  ;;  %v1350_v33 = vld [vmem:[#allocation2 + $0x38] sm:$0xf0] }
  0xea   :  { %v147_v26 = vpack.c.bf16 %v145_v32, %v144_v36  ;;  %1402 = vmatmul.msk.bf16.vlgmr.msra.gmra.mxu0 %vm2404_vm15, %v2098_v7  ;;  %1403 = vmatmul.msk.bf16.vlgmr.msra.gmra.mxu1 %vm2404_vm15, %v2098_v7  ;;  %v715_v13 = vld [vmem:[%s2401_s3] sm:$0xff] }
  0xeb   :  { %707 = vmatpush.msrb.mxu0 %v683_v53  ;;  %v291_v44 = vpack.c.bf16 %v289_v11, %v288_v12  ;;  %v1348_v8 = vld [vmem:[#allocation2 + $0x28] sm:$0xf]  ;;  %v1515_v19 = vld [vmem:[#allocation2 + $0x2c] sm:$0xf]  ;;  %738 = vmatpush.msrb.mxu1 %v715_v13 }
  0xec   :  { %149 = vst [vmem:[#allocation2 + $0x18] sm:$0x33] %v147_v26  ;;  %v1396_v10 = vld [vmem:[#allocation2 + $0x88] sm:$0xf]  ;;  %v1527_v16 = vld [vmem:[#allocation2 + $0x8c] sm:$0xf]  ;;  %v1349_v41 = vor.u32 %v1517_v9, %v1348_v8  ;;  %v1353_v14 = vor.u32 %v1515_v19, %v1350_v33 }
  0xed   :  { %708 = vmatpush.msrb.mxu0 %v682_v52  ;;  %293 = vst [vmem:[#allocation2 + $0x58] sm:$0x33] %v291_v44  ;;  %v1397_v48 = vor.u32 %v1529_v18, %v1396_v10  ;;  %v1401_v31 = vor.u32 %v1527_v16, %v1398_v61 }
  0xef   :  { %709 = vmatpush.msrb.mxu0 %v681_v15  ;;  %577 = vmatpush.bf16.msra.mxu2 %v1397_v48  ;;  %v79_v25 = vpop.permute.xlu0 %78 }
  0xf0   :  { %590 = vmatpush.bf16.msra.mxu3 %v1401_v31  ;;  %v85_v46 = vsel %vm84_vm7, %v79_v25, %v1804_v24  ;;  %v86_v51 = vsel %vm84_vm7, %v1869_v20, %v79_v25  ;;  %v684_v20 = vld [vmem:[%s2400_s6] sm:$0xff] }
  0xf1   :  { %710 = vmatpush.msrb.mxu0 %v680_v29  ;;  %v101_v43 = vmul.f32 %v93_v39, %v86_v51  ;;  %v102_v6 = vmul.f32 %v94_v38, %v85_v46 }
  0xf3   :  { %v104_v55 = vpack.c.bf16 %v102_v6, %v101_v43  ;;  %578 = vmatpush.bf16.msra.mxu2 %v1381_v59  ;;  %v1513_v0 = vld [vmem:[#allocation2 + $0x14] sm:$0xf0]  ;;  %v1334_v50 = vld [vmem:[#allocation2 + $0x18] sm:$0xf0]  ;;  %798 = vmatpush.msra.mxu0 %v718_v63 }
  0xf4   :  { %591 = vmatpush.bf16.msra.mxu3 %v1385_v45  ;;  %v1521_v56 = vld [vmem:[#allocation2 + $0x54] sm:$0xf0]  ;;  %v1366_v21 = vld [vmem:[#allocation2 + $0x58] sm:$0xf0] }
  0xf5   :  { %106 = vst [vmem:[#allocation2 + $0x8] sm:$0x33] %v104_v55  ;;  %v1365_v24 = vor.u32 %v1521_v56, %v1364_v58  ;;  %v1369_v5 = vor.u32 %v1519_v62, %v1366_v21 }
  0xf7   :  { %579 = vmatpush.bf16.msra.mxu2 %v1365_v24 }
  0xf8   :  { %592 = vmatpush.bf16.msra.mxu3 %v1369_v5 }
  0xfa   :  { %1410 = vmatmul.msk.f32.vlgmr.msrb.gmra.mxu0 %vm691_vm10, %v684_v20 }
  0xfb   :  { %580 = vmatpush.bf16.msra.mxu2 %v1349_v41 }
  0xfc   :  { %593 = vmatpush.bf16.msra.mxu3 %v1353_v14  ;;  %v1332_v37 = vld [vmem:[#allocation2 + $0x8] sm:$0xf]  ;;  %v1511_v49 = vld [vmem:[#allocation2 + $0xc] sm:$0xf] }
  0xfd   :  { %v1333_v53 = vor.u32 %v1513_v0, %v1332_v37  ;;  %v1337_v1 = vor.u32 %v1511_v49, %v1334_v50 }
  0xff   :  { %581 = vmatpush.bf16.msra.mxu2 %v1333_v53 }
 0x100   :  { %594 = vmatpush.bf16.msra.mxu3 %v1337_v1 }
 0x102   :  { %1404 = vmatmul.msk.bf16.vlgmr.msra.gmra.mxu2 %vm2404_vm15, %v2098_v7 }
 0x103   :  { %1405 = vmatmul.msk.bf16.vlgmr.msra.gmra.mxu3 %vm2404_vm15, %v2098_v7  ;;  %758 = vmatpush.msrb.mxu2 %v716_v23 }
 0x104   :  { %778 = vmatpush.msrb.mxu3 %v717_v54 }
 0x13a   :  { %v689_v34 = vpop.permute.xlu2 %688 }
 0x167   :  { %v2146_v22 = vpop.f32.mrf.mxu0  ;;  %v2148_v40 = vpop.f32.mrf.mxu1 }
 0x16f   :  { %v559_v17 = vpop.f32.mrf.mxu0  ;;  %v572_v27 = vpop.f32.mrf.mxu1 }
 0x177   :  { %v712_v3 = vpop.f32.mrf.mxu0 }
 0x178   :  { %v713_v30 = vadd.f32 %v712_v3, %v689_v34 }
 0x17a   :  { %1411 = vmatmul.msk.f32.vlgmr.msrb.gmra.mxu1 %vm719_vm11, %v713_v30  ;;  %1412 = vmatmul.msk.f32.vlgmr.msrb.gmra.mxu2 %vm719_vm11, %v713_v30 }
 0x17b   :  { %1413 = vmatmul.msk.f32.vlgmr.msrb.gmra.mxu3 %vm719_vm11, %v713_v30  ;;  %1414 = vmatmul.msk.f32.vlgmr.msra.gmra.mxu0 %vm719_vm11, %v713_v30 }
 0x185   :  { %v2150_v7 = vpop.f32.mrf.mxu2 }
 0x186   :  { %v2152_v52 = vpop.f32.mrf.mxu3 }
 0x18d   :  { %v585_v36 = vpop.f32.mrf.mxu2 }
 0x18e   :  { %v598_v32 = vpop.f32.mrf.mxu3 }
 0x1f7   :  { %v740_v60 = vpop.f32.mrf.mxu1 }
 0x1f8   :  { %v803_v28 = vadd.f32 %v740_v60, %v2146_v22  ;;  %v800_v12 = vpop.f32.mrf.mxu0 }
 0x1f9   :  { %v2156_v11 = vadd.f32 %v800_v12, %v2152_v52 }
 0x1fa   :  { %v1415_v15 = vmul.f32 -1.442695, %v803_v28 }
 0x1fb   :  { %v1418_v35 = vmul.f32 -1.442695, %v2156_v11 }
 0x1fc   :  { %1578 = vpow2.f32 %v1415_v15 }
 0x1fd   :  { %1580 = vpow2.f32 %v1418_v35  ;;  %v760_v26 = vpop.f32.mrf.mxu2 }
 0x1fe   :  { %v2160_v18 = vadd.f32 %v760_v26, %v2148_v40  ;;  %v780_v61 = vpop.f32.mrf.mxu3 }
 0x1ff   :  { %v2163_v44 = vadd.f32 %v780_v61, %v2150_v7 }
 0x200   :  { %v1416_v10 = vmul.f32 -1.442695, %v2160_v18 }
 0x201   :  { %v1417_v16 = vmul.f32 -1.442695, %v2163_v44 }
 0x202   :  { %v1579_v29 = vpop.eup %1578  ;;  %1582 = vpow2.f32 %v1416_v10 }
 0x203   :  { %v1581_v48 = vpop.eup %1580  ;;  %v819_v31 = vadd.f32 1.0, %v1579_v29  ;;  %1584 = vpow2.f32 %v1417_v16 }
 0x204   :  { %v822_v39 = vadd.f32 1.0, %v1581_v48 }
 0x205   :  { %1586 = vrcp.f32 %v819_v31  ;;  %v834_v6 = vand.u32 2147483648, %v819_v31  ;;  %v832_v58 = vand.u32 2147483647, %v819_v31  ;;  %vm828_vm13 = vweird.f32 %v819_v31 }
 0x206   :  { %1588 = vrcp.f32 %v822_v39  ;;  %vm873_vm14 = vweird.f32 %v822_v39  ;;  %v877_v24 = vand.u32 2147483647, %v822_v39  ;;  %v879_v33 = vand.u32 2147483648, %v822_v39 }
 0x207   :  { %v835_v8 = vor.u32 1.1754944e-38, %v834_v6  ;;  %vm833_vm10 = vcmp.eq.f32.partialorder %v832_v58, 8.507059e+37  ;;  %v1549_v58 = vld [vmem:[#allocation2 + $0x94] sm:$0xf0] }
 0x208   :  { %v1583_v38 = vpop.eup %1582  ;;  %v880_v17 = vor.u32 1.1754944e-38, %v879_v33 }
 0x209   :  { %v1585_v47 = vpop.eup %1584  ;;  %v820_v2 = vadd.f32 1.0, %v1583_v38 }
 0x20a   :  { %v821_v25 = vadd.f32 1.0, %v1585_v47 }
 0x20b   :  { %v1587_v46 = vpop.eup %1586  ;;  %1590 = vrcp.f32 %v820_v2  ;;  %v847_v0 = vand.u32 2147483647, %v820_v2  ;;  %v849_v37 = vand.u32 2147483648, %v820_v2 }
 0x20c   :  { %v1589_v51 = vpop.eup %1588  ;;  %v824_v57 = vmul.f32 %v1587_v46, %v819_v31  ;;  %1592 = vrcp.f32 %v821_v25  ;;  %vm829_vm12 = vweird.f32 %v1587_v46  ;;  %v864_v13 = vand.u32 2147483648, %v821_v25  ;;  %v1425_v31 = vld [vmem:[%s2396_s2 + $0x20] ss:$8 sm:$0xf] }
 0x20d   :  { %v869_v4 = vmul.f32 %v1589_v51, %v822_v39  ;;  %vm830_vm4 = vmor %vm828_vm13, %vm829_vm12  ;;  %vm874_vm9 = vweird.f32 %v1589_v51  ;;  %v862_v63 = vand.u32 2147483647, %v821_v25  ;;  %v850_v34 = vor.u32 1.1754944e-38, %v849_v37 }
 0x20e   :  { %v825_v43 = vsub.f32 1.0, %v824_v57  ;;  %vm2168_vm11 = vmor %vm873_vm14, %vm874_vm9  ;;  %vm878_vm14 = vcmp.eq.f32.partialorder %v877_v24, 8.507059e+37  ;;  %v865_v32 = vor.u32 1.1754944e-38, %v864_v13  ;;  %v1117_v39 = vperm.slane %v1425_v31, 2 }
 0x20f   :  { %v870_v59 = vsub.f32 1.0, %v869_v4  ;;  %vm863_vm8 = vcmp.eq.f32.partialorder %v862_v63, 8.507059e+37  ;;  %v1118_v38 = vperm.slane %v1425_v31, 3 }
 0x210   :  { %v826_v45 = vmul.f32 %v1587_v46, %v825_v43 }
 0x211   :  { %v1591_v62 = vpop.eup %1590  ;;  %v871_v55 = vmul.f32 %v1589_v51, %v870_v59 }
 0x212   :  { %v1593_v56 = vpop.eup %1592  ;;  %v827_v21 = vadd.f32 %v1587_v46, %v826_v45  ;;  %v839_v5 = vmul.f32 %v1591_v62, %v820_v2  ;;  %vm844_vm12 = vweird.f32 %v1591_v62 }
 0x213   :  { %v872_v19 = vadd.f32 %v1589_v51, %v871_v55  ;;  %v854_v20 = vmul.f32 %v1593_v56, %v821_v25  ;;  %vm859_vm13 = vweird.f32 %v1593_v56  ;;  %v2236_v55 = vld [vmem:[%s2396_s2 + $0x5] ss:$8 sm:$0xf] }
 0x214   :  { %v831_v9 = vsel %vm830_vm4, %v1587_v46, %v827_v21  ;;  %v840_v41 = vsub.f32 1.0, %v839_v5  ;;  %vm843_vm4 = vweird.f32 %v820_v2 }
 0x215   :  { %v836_v14 = vsel %vm833_vm10, %v835_v8, %v831_v9  ;;  %v855_v49 = vsub.f32 1.0, %v854_v20  ;;  %v876_v23 = vsel %vm2168_vm11, %v1589_v51, %v872_v19  ;;  %vm845_vm9 = vmor %vm843_vm4, %vm844_vm12  ;;  %vm858_vm10 = vweird.f32 %v821_v25 }
 0x216   :  { %v883_v50 = vmul.f32 %v836_v14, %v803_v28  ;;  %v841_v1 = vmul.f32 %v1591_v62, %v840_v41  ;;  %v881_v30 = vsel %vm878_vm14, %v880_v17, %v876_v23  ;;  %vm848_vm11 = vcmp.eq.f32.partialorder %v847_v0, 8.507059e+37  ;;  %vm860_vm15 = vmor %vm858_vm10, %vm859_vm13  ;;  %v2253_v0 = vld [vmem:[%s2396_s2 + $0x2] ss:$8 sm:$0xf] }
 0x217   :  { %v856_v54 = vmul.f32 %v1593_v56, %v855_v49  ;;  %v886_v35 = vmul.f32 %v881_v30, %v2156_v11  ;;  %v1027_v8 = vperm.slane %v2236_v55, 2  ;;  %v1028_v19 = vperm.slane %v2236_v55, 3 }
 0x218   :  { %v842_v27 = vadd.f32 %v1591_v62, %v841_v1  ;;  %1071 = vrot.lane.b32.xlu2 %v883_v50, %s1598_s12  ;;  %1041 = vrot.lane.b32.xlu1 %v883_v50, %s1597_s11  ;;  %v961_v53 = vperm.slane %v2253_v0, 0  ;;  %v962_v1 = vperm.slane %v2253_v0, 1  ;;  %v1115_v30 = vperm.slane %v1425_v31, 0 }
 0x219   :  { %v857_v3 = vadd.f32 %v1593_v56, %v856_v54  ;;  %1101 = vrot.lane.b32.xlu0 %v883_v50, %s1599_s13 }
 0x21a   :  { %v846_v36 = vsel %vm845_vm9, %v1591_v62, %v842_v27  ;;  %v1502_v62 = vld [vmem:[#allocation2 + $0x98] sm:$0xf0] }
 0x21b   :  { %v851_v60 = vsel %vm848_vm11, %v850_v34, %v846_v36  ;;  %v861_v28 = vsel %vm860_vm15, %v1593_v56, %v857_v3  ;;  %v1116_v36 = vperm.slane %v1425_v31, 1 }
 0x21c   :  { %v884_v12 = vmul.f32 %v851_v60, %v2160_v18  ;;  %v866_v15 = vsel %vm863_vm8, %v865_v32, %v861_v28 }
 0x21d   :  { %v885_v26 = vmul.f32 %v866_v15, %v2163_v44 }
 0x21e   :  { %v1007_v61 = vpack.c.bf16 %v884_v12, %v883_v50 }
 0x21f   :  { %v1008_v10 = vpack.c.bf16 %v886_v35, %v885_v26 }
 0x220   :  { %1009 = vst [vmem:[#allocation2 + $0x40] sm:$0xff] %v1007_v61  ;;  %1077 = vrot.lane.b32.xlu2 %v886_v35, %s1598_s12  ;;  %1047 = vrot.lane.b32.xlu1 %v886_v35, %s1597_s11  ;;  %v1423_v61 = vld [vmem:[%s2396_s2 + $0x6] ss:$8 sm:$0xf] }
 0x221   :  { %1010 = vst [vmem:[#allocation2 + $0x48] sm:$0xff] %v1008_v10  ;;  %1107 = vrot.lane.b32.xlu0 %v886_v35, %s1599_s13 }
 0x228   :  { %977 = vrot.lane.b32.xlu2 %v883_v50, %s1595_s9  ;;  %947 = vrot.lane.b32.xlu1 %v883_v50, %s1594_s0 }
 0x229   :  { %1011 = vrot.lane.b32.xlu0 %v883_v50, %s1596_s10 }
 0x230   :  { %983 = vrot.lane.b32.xlu2 %v886_v35, %s1595_s9  ;;  %953 = vrot.lane.b32.xlu1 %v886_v35, %s1594_s0 }
 0x231   :  { %1017 = vrot.lane.b32.xlu0 %v886_v35, %s1596_s10 }
 0x238   :  { %1105 = vrot.lane.b32.xlu2 %v885_v26, %s1599_s13  ;;  %917 = vrot.lane.b32.xlu1 %v883_v50, %s1601_s15 }
 0x239   :  { %887 = vrot.lane.b32.xlu0 %v883_v50, %s1600_s14 }
 0x240   :  { %1043 = vrot.lane.b32.xlu2 %v884_v12, %s1597_s11  ;;  %1103 = vrot.lane.b32.xlu1 %v884_v12, %s1599_s13 }
 0x241   :  { %893 = vrot.lane.b32.xlu0 %v886_v35, %s1600_s14 }
 0x248   :  { %1015 = vrot.lane.b32.xlu2 %v885_v26, %s1596_s10  ;;  %1075 = vrot.lane.b32.xlu1 %v885_v26, %s1598_s12 }
 0x249   :  { %1045 = vrot.lane.b32.xlu0 %v885_v26, %s1597_s11 }
 0x250   :  { %949 = vrot.lane.b32.xlu2 %v884_v12, %s1594_s0  ;;  %1013 = vrot.lane.b32.xlu1 %v884_v12, %s1596_s10 }
 0x251   :  { %1073 = vrot.lane.b32.xlu0 %v884_v12, %s1598_s12 }
 0x258   :  { %891 = vrot.lane.b32.xlu2 %v885_v26, %s1600_s14  ;;  %981 = vrot.lane.b32.xlu1 %v885_v26, %s1595_s9 }
 0x259   :  { %951 = vrot.lane.b32.xlu0 %v885_v26, %s1594_s0 }
 0x260   :  { %919 = vrot.lane.b32.xlu2 %v884_v12, %s1601_s15  ;;  %889 = vrot.lane.b32.xlu1 %v884_v12, %s1600_s14 }
 0x261   :  { %979 = vrot.lane.b32.xlu0 %v884_v12, %s1595_s9 }
 0x268   :  { %923 = vrot.lane.b32.xlu1 %v886_v35, %s1601_s15 }
 0x269   :  { %921 = vrot.lane.b32.xlu0 %v885_v26, %s1601_s15  ;;  %v1424_v26 = vld [vmem:[%s2396_s2 + $0x7] ss:$8 sm:$0xf] }
 0x26a   :  { %v1088_v31 = vperm.slane %v1424_v26, 3 }
 0x272   :  { %v2210_v11 = vpop.permute.xlu2 %1071 }
 0x27a   :  { %v2212_v18 = vpop.permute.xlu2 %1077 }
 0x282   :  { %v2214_v44 = vpop.permute.xlu2 %977 }
 0x28a   :  { %v2216_v16 = vpop.permute.xlu2 %983  ;;  %v2218_v29 = vpop.permute.xlu1 %1041 }
 0x28b   :  { %v1102_v48 = vpop.permute.xlu0 %1101 }
 0x292   :  { %v1106_v47 = vpop.permute.xlu2 %1105  ;;  %v2223_v2 = vpop.permute.xlu1 %1047 }
 0x293   :  { %v1108_v25 = vpop.permute.xlu0 %1107 }
 0x294   :  { %v1109_v46 = vsel %vm399_vm6, %v1106_v47, %v1108_v25  ;;  %v1112_v51 = vsel %vm399_vm6, %v1108_v25, %v1102_v48  ;;  %v1056_v25 = vperm.slane %v1423_v61, 1 }
 0x295   :  { %v1125_v57 = vmul.f32 %v1117_v39, %v1109_v46  ;;  %v1126_v4 = vmul.f32 %v1118_v38, %v1112_v51  ;;  %v1058_v39 = vperm.slane %v1423_v61, 3  ;;  %v1087_v38 = vperm.slane %v1424_v26, 2 }
 0x296   :  { %v1057_v46 = vperm.slane %v1423_v61, 2  ;;  %v1052_v51 = vsel %vm313_vm3, %v2223_v2, %v2218_v29 }
 0x297   :  { %v1128_v43 = vpack.c.bf16 %v1126_v4, %v1125_v57 }
 0x299   :  { %1130 = vst [vmem:[#allocation2 + $0x88] sm:$0xff] %v1128_v43 }
 0x29a   :  { %v2229_v6 = vpop.permute.xlu2 %1043  ;;  %v948_v59 = vpop.permute.xlu1 %947 }
 0x29b   :  { %v2231_v45 = vpop.permute.xlu0 %1011  ;;  %v1051_v57 = vsel %vm313_vm3, %v2218_v29, %v2229_v6 }
 0x2a0   :  { %v1500_v56 = vld [vmem:[#allocation2 + $0x88] sm:$0xf]  ;;  %v1547_v21 = vld [vmem:[#allocation2 + $0x8c] sm:$0xf] }
 0x2a1   :  { %v1501_v24 = vor.u32 %v1549_v58, %v1500_v56  ;;  %v1505_v5 = vor.u32 %v1547_v21, %v1502_v62 }
 0x2a2   :  { %v2240_v20 = vpop.permute.xlu2 %1015  ;;  %v2242_v9 = vpop.permute.xlu1 %953 }
 0x2a3   :  { %1284 = vmatpush.bf16.msra.mxu3 %v1501_v24  ;;  %1297 = vmatpush.bf16.msrb.mxu0 %v1505_v5  ;;  %v1018_v33 = vpop.permute.xlu0 %1017  ;;  %v958_v13 = vsel %vm169_vm0, %v2242_v9, %v948_v59  ;;  %v1066_v24 = vmul.f32 %v1058_v39, %v1052_v51  ;;  %v964_v39 = vperm.slane %v2253_v0, 3 }
 0x2a4   :  { %v1019_v41 = vsel %vm270_vm2, %v2240_v20, %v1018_v33  ;;  %v1022_v14 = vsel %vm270_vm2, %v1018_v33, %v2231_v45  ;;  %v969_v27 = vmul.f32 %v961_v53, %v958_v13  ;;  %v1494_v33 = vld [vmem:[#allocation2 + $0x90] sm:$0xf0]  ;;  %v1086_v13 = vperm.slane %v1424_v26, 1 }
 0x2a5   :  { %v1035_v37 = vmul.f32 %v1027_v8, %v1019_v41  ;;  %v1036_v49 = vmul.f32 %v1028_v19, %v1022_v14  ;;  %v1548_v19 = vld [vmem:[#allocation2 + $0x8c] sm:$0xf0] }
 0x2a7   :  { %v1038_v50 = vpack.c.bf16 %v1036_v49, %v1035_v37 }
 0x2a9   :  { %1040 = vst [vmem:[#allocation2 + $0x58] sm:$0xff] %v1038_v50  ;;  %v1025_v50 = vperm.slane %v2236_v55, 0 }
 0x2aa   :  { %v2260_v23 = vpop.permute.xlu2 %949  ;;  %v2262_v54 = vpop.permute.xlu1 %917 }
 0x2ab   :  { %v957_v63 = vsel %vm169_vm0, %v948_v59, %v2260_v23  ;;  %v2267_v17 = vpop.permute.xlu0 %887 }
 0x2ac   :  { %v970_v34 = vmul.f32 %v962_v1, %v957_v63 }
 0x2ae   :  { %v973_v3 = vpack.c.bf16 %v970_v34, %v969_v27 }
 0x2b0   :  { %975 = vst [vmem:[#allocation2 + $0x20] sm:$0xff] %v973_v3  ;;  %v1470_v51 = vld [vmem:[#allocation2 + $0x58] sm:$0xf0] }
 0x2b2   :  { %v1104_v32 = vpop.permute.xlu1 %1103 }
 0x2b3   :  { %v1110_v60 = vsel %vm399_vm6, %v1104_v32, %v1106_v47  ;;  %v1111_v28 = vsel %vm399_vm6, %v1102_v48, %v1104_v32  ;;  %v2273_v12 = vpop.permute.xlu0 %893  ;;  %v1082_v48 = vsel %vm356_vm5, %v2212_v18, %v2210_v11  ;;  %v1055_v47 = vperm.slane %v1423_v61, 0 }
 0x2b4   :  { %v1123_v15 = vmul.f32 %v1115_v30, %v1111_v28  ;;  %v1124_v35 = vmul.f32 %v1116_v36, %v1110_v60  ;;  %v1096_v58 = vmul.f32 %v1088_v31, %v1082_v48  ;;  %v963_v61 = vperm.slane %v2253_v0, 2 }
 0x2b5   :  { %v1063_v5 = vmul.f32 %v1055_v47, %v1051_v57 }
 0x2b6   :  { %v1127_v10 = vpack.c.bf16 %v1124_v35, %v1123_v15 }
 0x2b8   :  { %1129 = vst [vmem:[#allocation2 + $0x80] sm:$0xff] %v1127_v10 }
 0x2ba   :  { %v1076_v4 = vpop.permute.xlu1 %1075 }
 0x2bb   :  { %v1079_v43 = vsel %vm356_vm5, %v1076_v4, %v2212_v18  ;;  %v1046_v59 = vpop.permute.xlu0 %1045 }
 0x2bc   :  { %v1095_v62 = vmul.f32 %v1087_v38, %v1079_v43  ;;  %v1049_v56 = vsel %vm313_vm3, %v1046_v59, %v2223_v2  ;;  %v1050_v21 = vsel %vm313_vm3, %v2229_v6, %v1046_v59  ;;  %v1026_v2 = vperm.slane %v2236_v55, 1  ;;  %v892_v43 = vpop.permute.xlu2 %891 }
 0x2bd   :  { %v1064_v8 = vmul.f32 %v1056_v25, %v1050_v21  ;;  %v1065_v29 = vmul.f32 %v1057_v46, %v1049_v56  ;;  %v1085_v6 = vperm.slane %v1424_v26, 0  ;;  %v1541_v46 = vld [vmem:[#allocation2 + $0x54] sm:$0xf0] }
 0x2be   :  { %v1098_v41 = vpack.c.bf16 %v1096_v58, %v1095_v62 }
 0x2bf   :  { %v1067_v14 = vpack.c.bf16 %v1064_v8, %v1063_v5  ;;  %v1068_v18 = vpack.c.bf16 %v1066_v24, %v1065_v29  ;;  %v1492_v37 = vld [vmem:[#allocation2 + $0x80] sm:$0xf]  ;;  %v1546_v49 = vld [vmem:[#allocation2 + $0x84] sm:$0xf]  ;;  %v1468_v24 = vld [vmem:[#allocation2 + $0x48] sm:$0xf] }
 0x2c0   :  { %1100 = vst [vmem:[#allocation2 + $0x78] sm:$0xff] %v1098_v41  ;;  %v1493_v53 = vor.u32 %v1548_v19, %v1492_v37  ;;  %v1497_v1 = vor.u32 %v1546_v49, %v1494_v33  ;;  %v1539_v5 = vld [vmem:[#allocation2 + $0x4c] sm:$0xf]  ;;  %v1469_v29 = vor.u32 %v1541_v46, %v1468_v24  ;;  %v895_v41 = vsel %vm84_vm7, %v892_v43, %v2273_v12 }
 0x2c1   :  { %1069 = vst [vmem:[#allocation2 + $0x60] sm:$0xff] %v1067_v14  ;;  %v1473_v19 = vor.u32 %v1539_v5, %v1470_v51 }
 0x2c2   :  { %1070 = vst [vmem:[#allocation2 + $0x68] sm:$0xff] %v1068_v18  ;;  %v1014_v63 = vpop.permute.xlu1 %1013  ;;  %1258 = vmatpush.bf16.msra.mxu1 %v1493_v53  ;;  %1271 = vmatpush.bf16.msra.mxu2 %v1497_v1 }
 0x2c3   :  { %v1020_v27 = vsel %vm270_vm2, %v1014_v63, %v2240_v20  ;;  %v1021_v34 = vsel %vm270_vm2, %v2231_v45, %v1014_v63  ;;  %v1074_v3 = vpop.permute.xlu0 %1073  ;;  %v2318_v45 = vld [vmem:[%s2396_s2 + $0x3] ss:$8 sm:$0xf] }
 0x2c4   :  { %v1033_v30 = vmul.f32 %v1025_v50, %v1021_v34  ;;  %v1034_v55 = vmul.f32 %v1026_v2, %v1020_v27  ;;  %v1080_v36 = vsel %vm356_vm5, %v1074_v3, %v1076_v4  ;;  %v1081_v32 = vsel %vm356_vm5, %v2210_v11, %v1074_v3  ;;  %v899_v11 = vld [vmem:[%s2396_s2] ss:$8 sm:$0xf] }
 0x2c5   :  { %v1093_v60 = vmul.f32 %v1085_v6, %v1081_v32  ;;  %v1094_v28 = vmul.f32 %v1086_v13, %v1080_v36  ;;  %v991_v57 = vperm.slane %v2318_v45, 0  ;;  %v988_v4 = vsel %vm212_vm1, %v2216_v16, %v2214_v44 }
 0x2c6   :  { %v1037_v15 = vpack.c.bf16 %v1034_v55, %v1033_v30  ;;  %v901_v58 = vperm.slane %v899_v11, 0  ;;  %v904_v62 = vperm.slane %v899_v11, 3  ;;  %v994_v8 = vperm.slane %v2318_v45, 3 }
 0x2c7   :  { %v1097_v35 = vpack.c.bf16 %v1094_v28, %v1093_v60  ;;  %v1545_v26 = vld [vmem:[#allocation2 + $0x74] sm:$0xf0]  ;;  %v1486_v20 = vld [vmem:[#allocation2 + $0x78] sm:$0xf0]  ;;  %v902_v33 = vperm.slane %v899_v11, 1  ;;  %v903_v14 = vperm.slane %v899_v11, 2 }
 0x2c8   :  { %1039 = vst [vmem:[#allocation2 + $0x50] sm:$0xff] %v1037_v15  ;;  %v1476_v18 = vld [vmem:[#allocation2 + $0x60] sm:$0xf]  ;;  %v1542_v50 = vld [vmem:[#allocation2 + $0x64] sm:$0xf]  ;;  %v992_v6 = vperm.slane %v2318_v45, 1  ;;  %v912_v27 = vmul.f32 %v904_v62, %v895_v41 }
 0x2c9   :  { %1099 = vst [vmem:[#allocation2 + $0x70] sm:$0xff] %v1097_v35  ;;  %v1484_v10 = vld [vmem:[#allocation2 + $0x68] sm:$0xf]  ;;  %v1543_v31 = vld [vmem:[#allocation2 + $0x6c] sm:$0xf]  ;;  %v993_v13 = vperm.slane %v2318_v45, 2 }
 0x2ca   :  { %v982_v38 = vpop.permute.xlu1 %981  ;;  %v1485_v48 = vor.u32 %v1545_v26, %v1484_v10  ;;  %v1489_v47 = vor.u32 %v1543_v31, %v1486_v20  ;;  %v1460_v26 = vld [vmem:[#allocation2 + $0x40] sm:$0xf]  ;;  %v1538_v20 = vld [vmem:[#allocation2 + $0x44] sm:$0xf]  ;;  %vm2431_vm5 = vcmask 654336  }
 0x2cb   :  { %v952_v25 = vpop.permute.xlu0 %951  ;;  %v985_v37 = vsel %vm212_vm1, %v982_v38, %v2216_v16  ;;  %v1419_v45 = vld [vmem:[%s2396_s2 + $0x1] ss:$8 sm:$0xf]  ;;  %vm2432_vm6 = vmmov %vm2431_vm5 }
 0x2cc   :  { %1285 = vmatpush.bf16.msra.mxu3 %v1485_v48  ;;  %1298 = vmatpush.bf16.msrb.mxu0 %v1489_v47  ;;  %v955_v0 = vsel %vm169_vm0, %v952_v25, %v2242_v9  ;;  %v956_v59 = vsel %vm169_vm0, %v2260_v23, %v952_v25  ;;  %v898_v9 = vsel %vm84_vm7, %v2273_v12, %v2267_v17  ;;  %vm2427_vm0 = vcmp.lt.s32.totalorder %v1737_v42, 16  ;;  %vm2434_vm8 = vmmov %vm2431_vm5 }
 0x2cd   :  { %v971_v56 = vmul.f32 %v963_v61, %v956_v59  ;;  %v972_v21 = vmul.f32 %v964_v39, %v955_v0  ;;  %v999_v12 = vmul.f32 %v991_v57, %v988_v4  ;;  %v909_v63 = vmul.f32 %v901_v58, %v898_v9  ;;  %v920_v39 = vpop.permute.xlu2 %919  ;;  %vm2429_vm2 = vmmov %vm2427_vm0 }
 0x2ce   :  { %v1002_v55 = vmul.f32 %v994_v8, %v985_v37  ;;  %v927_v46 = vsel %vm2427_vm0, %v2262_v54, %v920_v39  ;;  %v933_v51 = vperm.slane %v1419_v45, 2  ;;  %v934_v57 = vperm.slane %v1419_v45, 3  ;;  %vm2430_vm3 = vmmov %vm2427_vm0 }
 0x2cf   :  { %v974_v23 = vpack.c.bf16 %v972_v21, %v971_v56  ;;  %v1540_v3 = vld [vmem:[#allocation2 + $0x4c] sm:$0xf0]  ;;  %v1462_v30 = vld [vmem:[#allocation2 + $0x50] sm:$0xf0] }
 0x2d0   :  { %1286 = vmatpush.bf16.msra.mxu3 %v1469_v29  ;;  %1299 = vmatpush.bf16.msrb.mxu0 %v1473_v19  ;;  %v1544_v49 = vld [vmem:[#allocation2 + $0x6c] sm:$0xf0]  ;;  %v1478_v2 = vld [vmem:[#allocation2 + $0x70] sm:$0xf0]  ;;  %v1461_v10 = vor.u32 %v1540_v3, %v1460_v26  ;;  %v1465_v31 = vor.u32 %v1538_v20, %v1462_v30  ;;  %v1444_v29 = vld [vmem:[#allocation2 + $0x20] sm:$0xf] }
 0x2d1   :  { %976 = vst [vmem:[#allocation2 + $0x28] sm:$0xff] %v974_v23  ;;  %v1477_v53 = vor.u32 %v1544_v49, %v1476_v18  ;;  %v1481_v1 = vor.u32 %v1542_v50, %v1478_v2  ;;  %v1534_v19 = vld [vmem:[#allocation2 + $0x24] sm:$0xf] }
 0x2d2   :  { %v890_v34 = vpop.permute.xlu1 %889 }
 0x2d3   :  { %v896_v16 = vsel %vm84_vm7, %v890_v34, %v892_v43  ;;  %v897_v36 = vsel %vm84_vm7, %v2267_v17, %v890_v34  ;;  %1259 = vmatpush.bf16.msra.mxu1 %v1477_v53  ;;  %1272 = vmatpush.bf16.msra.mxu2 %v1481_v1  ;;  %v980_v32 = vpop.permute.xlu0 %979  ;;  %vm2433_vm7 = vmmov %vm2431_vm5 }
 0x2d4   :  { %v910_v60 = vmul.f32 %v902_v33, %v897_v36  ;;  %v911_v28 = vmul.f32 %v903_v14, %v896_v16  ;;  %v986_v15 = vsel %vm212_vm1, %v980_v32, %v982_v38  ;;  %v987_v35 = vsel %vm212_vm1, %v2214_v44, %v980_v32  ;;  %vm2428_vm1 = vmmov %vm2427_vm0 }
 0x2d5   :  { %v1000_v61 = vmul.f32 %v992_v6, %v987_v35  ;;  %v1001_v17 = vmul.f32 %v993_v13, %v986_v15  ;;  %v932_v38 = vperm.slane %v1419_v45, 1  ;;  %v931_v44 = vperm.slane %v1419_v45, 0 }
 0x2d6   :  { %v913_v11 = vpack.c.bf16 %v910_v60, %v909_v63  ;;  %v914_v48 = vpack.c.bf16 %v912_v27, %v911_v28 }
 0x2d7   :  { %v1003_v47 = vpack.c.bf16 %v1000_v61, %v999_v12  ;;  %v1004_v25 = vpack.c.bf16 %v1002_v55, %v1001_v17  ;;  %1260 = vmatpush.bf16.msra.mxu1 %v1461_v10  ;;  %1273 = vmatpush.bf16.msra.mxu2 %v1465_v31  ;;  %v940_v59 = vmul.f32 %v932_v38, %v927_v46  ;;  %v1131_v55 = vld [vmem:[%s2402_s5] sm:$0xf] }
 0x2d8   :  { %915 = vst [vmem:[#allocation2] sm:$0xff] %v913_v11  ;;  %v1452_v33 = vld [vmem:[#allocation2 + $0x28] sm:$0xf]  ;;  %v1535_v18 = vld [vmem:[#allocation2 + $0x2c] sm:$0xf] }
 0x2d9   :  { %916 = vst [vmem:[#allocation2 + $0x8] sm:$0xff] %v914_v48 }
 0x2da   :  { %1005 = vst [vmem:[#allocation2 + $0x30] sm:$0xff] %v1003_v47  ;;  %v924_v4 = vpop.permute.xlu1 %923 }
 0x2db   :  { %1006 = vst [vmem:[#allocation2 + $0x38] sm:$0xff] %v1004_v25  ;;  %v928_v43 = vsel %vm2428_vm1, %v924_v4, %v2262_v54  ;;  %v922_v0 = vpop.permute.xlu0 %921 }
 0x2dc   :  { %v939_v58 = vmul.f32 %v931_v44, %v928_v43  ;;  %v925_v62 = vsel %vm2429_vm2, %v922_v0, %v924_v4  ;;  %v926_v56 = vsel %vm2430_vm3, %v920_v39, %v922_v0 }
 0x2dd   :  { %v941_v21 = vmul.f32 %v933_v51, %v926_v56  ;;  %v942_v24 = vmul.f32 %v934_v57, %v925_v62 }
 0x2de   :  { %v943_v5 = vpack.c.bf16 %v940_v59, %v939_v58 }
 0x2df   :  { %v944_v8 = vpack.c.bf16 %v942_v24, %v941_v21  ;;  %v1428_v42 = vld [vmem:[#allocation2] sm:$0xf]  ;;  %v1530_v2 = vld [vmem:[#allocation2 + $0x4] sm:$0xf] }
 0x2e0   :  { %945 = vst [vmem:[#allocation2 + $0x10] sm:$0xff] %v943_v5  ;;  %v1436_v6 = vld [vmem:[#allocation2 + $0x8] sm:$0xf]  ;;  %v1531_v27 = vld [vmem:[#allocation2 + $0xc] sm:$0xf] }
 0x2e1   :  { %946 = vst [vmem:[#allocation2 + $0x18] sm:$0xff] %v944_v8  ;;  %v1536_v41 = vld [vmem:[#allocation2 + $0x2c] sm:$0xf0]  ;;  %v1446_v54 = vld [vmem:[#allocation2 + $0x30] sm:$0xf0] }
 0x2e2   :  { %v1445_v9 = vor.u32 %v1536_v41, %v1444_v29  ;;  %v1449_v23 = vor.u32 %v1534_v19, %v1446_v54  ;;  %v1537_v14 = vld [vmem:[#allocation2 + $0x34] sm:$0xf0]  ;;  %v1454_v37 = vld [vmem:[#allocation2 + $0x38] sm:$0xf0] }
 0x2e3   :  { %v1453_v49 = vor.u32 %v1537_v14, %v1452_v33  ;;  %v1457_v50 = vor.u32 %v1535_v18, %v1454_v37 }
 0x2e4   :  { %1261 = vmatpush.bf16.msra.mxu1 %v1445_v9  ;;  %1274 = vmatpush.bf16.msra.mxu2 %v1449_v23 }
 0x2e5   :  { %1287 = vmatpush.bf16.msra.mxu3 %v1453_v49  ;;  %1300 = vmatpush.bf16.msrb.mxu0 %v1457_v50 }
 0x2e7   :  { %v1532_v53 = vld [vmem:[#allocation2 + $0xc] sm:$0xf0]  ;;  %v1430_v1 = vld [vmem:[#allocation2 + $0x10] sm:$0xf0] }
 0x2e8   :  { %v1429_v13 = vor.u32 %v1532_v53, %v1428_v42  ;;  %v1433_v12 = vor.u32 %v1530_v2, %v1430_v1  ;;  %v1533_v63 = vld [vmem:[#allocation2 + $0x14] sm:$0xf0]  ;;  %v1438_v34 = vld [vmem:[#allocation2 + $0x18] sm:$0xf0] }
 0x2e9   :  { %v1437_v3 = vor.u32 %v1533_v63, %v1436_v6  ;;  %v1441_v30 = vor.u32 %v1531_v27, %v1438_v34 }
 0x2ea   :  { %1262 = vmatpush.bf16.msra.mxu1 %v1429_v13  ;;  %1275 = vmatpush.bf16.msra.mxu2 %v1433_v12 }
 0x2eb   :  { %1288 = vmatpush.bf16.msra.mxu3 %v1437_v3  ;;  %1301 = vmatpush.bf16.msrb.mxu0 %v1441_v30 }
 0x2ed   :  { %1506 = vmatmul.msk.bf16.vlgmr.msra.gmra.mxu1 %vm2431_vm5, %v1131_v55  ;;  %1507 = vmatmul.msk.bf16.vlgmr.msra.gmra.mxu2 %vm2432_vm6, %v1131_v55 }
 0x2ee   :  { %1508 = vmatmul.msk.bf16.vlgmr.msra.gmra.mxu3 %vm2433_vm7, %v1131_v55  ;;  %1509 = vmatmul.msk.bf16.vlgmr.msrb.gmra.mxu0 %vm2434_vm8, %v1131_v55 }
 0x36a   :  { %v1264_v16 = vpop.f32.mrf.mxu1 }
 0x36b   :  { %v1265_v36 = vadd.f32 %v1264_v16, %v2146_v22  ;;  %v1303_v32 = vpop.f32.mrf.mxu0 }
 0x36c   :  { %v1304_v60 = vadd.f32 %v1303_v32, %v2152_v52 }
 0x36d   :  { %1307 = vst [vmem:[%s2403_s8] sm:$0xff] %v1265_v36 }
 0x36e   :  { %1310 = vst [vmem:[%s2403_s8 + $0x18] sm:$0xff] %v1304_v60 }
 0x370   :  { %v1277_v28 = vpop.f32.mrf.mxu2 }
 0x371   :  { %v1278_v15 = vadd.f32 %v1277_v28, %v2148_v40  ;;  %v1290_v35 = vpop.f32.mrf.mxu3 }
 0x372   :  { %v1291_v26 = vadd.f32 %v1290_v35, %v2150_v7  ;;  %v1266_v20 = vpop.f32.mrf.mxu1 }
 0x373   :  { %1308 = vst [vmem:[%s2403_s8 + $0x8] sm:$0xff] %v1278_v15  ;;  %v1305_v22 = vpop.f32.mrf.mxu0 }
 0x374   :  { %1309 = vst [vmem:[%s2403_s8 + $0x10] sm:$0xff] %v1291_v26 }
 0x378   :  { %v1279_v52 = vpop.f32.mrf.mxu2 }
 0x379   :  { %v1292_v45 = vpop.f32.mrf.mxu3 }

</bundles_post_ra>
